<compile_context>
chip_gen: v6e
topology: v6e:2x2x1
jax: 0.10.0
libtpu: 0.0.40
codegen_flags: <defaults>
</compile_context>

<pallas_src>
import functools

import jax
import jax.numpy as jnp
import numpy as np
from jax import lax
from jax.experimental import pallas as pl
from jax.experimental.pallas import tpu as pltpu


def gru_block_kernel(x_ref, h0_ref, wih_ref, whh_ref, bih_ref, bhh_ref,
                     wlin_ref, blin_ref, out_ref, hN_ref,
                     h_scr, hs_scr, gir_scr, giz_scr, gin_scr):
    c = pl.program_id(0)
    n_chunks = pl.num_programs(0)

    TC, B, C_in = x_ref.shape              # chunk length, padded batch, in ch.
    H = h_scr.shape[-1]
    C_out = out_ref.shape[-1]
    mm_dtype = wih_ref.dtype               # matmul operand dtype (f32 or bf16)

    # ---- carried hidden state: initialize once at chunk 0 -------------------
    @pl.when(c == 0)
    def _():
        h_scr[...] = h0_ref[0].astype(jnp.float32)

    # ---- phase 1: hoisted input projection for the WHOLE chunk --------------
    # One (TC*B, C_in) @ (C_in, H) matmul per gate (gates pre-split in wrapper),
    # so the serial recurrence below never slices at lane offsets.
    x_flat = x_ref[...].reshape(TC * B, C_in).astype(mm_dtype)
    wih = wih_ref[...]                              # (3, C_in, H)
    bih = bih_ref[...].astype(jnp.float32)          # (3, 1, H)
    bhh = bhh_ref[...].astype(jnp.float32)          # (3, 1, H)

    gir_scr[...] = (jnp.dot(x_flat, wih[0], preferred_element_type=jnp.float32)
                    + (bih[0] + bhh[0])).reshape(TC, B, H)    # b_hr folded in
    giz_scr[...] = (jnp.dot(x_flat, wih[1], preferred_element_type=jnp.float32)
                    + (bih[1] + bhh[1])).reshape(TC, B, H)    # b_hz folded in
    gin_scr[...] = (jnp.dot(x_flat, wih[2], preferred_element_type=jnp.float32)
                    + bih[2]).reshape(TC, B, H)               # b_hn stays inside r*(.)

    # ---- phase 2: serial recurrence over the chunk ---------------------------
    whh = whh_ref[...]                              # (3, H, H), loaded once
    whh_r, whh_z, whh_n = whh[0], whh[1], whh[2]
    bhh_n = jnp.broadcast_to(bhh[2], (B, H))        # broadcast hoisted out of loop

    def step(t, h):
        h_mm = h.astype(mm_dtype)
        gh_r = jnp.dot(h_mm, whh_r, preferred_element_type=jnp.float32)
        gh_z = jnp.dot(h_mm, whh_z, preferred_element_type=jnp.float32)
        gh_n = jnp.dot(h_mm, whh_n, preferred_element_type=jnp.float32) + bhh_n
        r = jax.nn.sigmoid(gir_scr[t] + gh_r)
        z = jax.nn.sigmoid(giz_scr[t] + gh_z)
        n = jnp.tanh(gin_scr[t] + r * gh_n)
        h_new = (1.0 - z) * n + z * h
        hs_scr[t] = h_new
        return h_new

    h_final = lax.fori_loop(0, TC, step, h_scr[...], unroll=True)
    h_scr[...] = h_final

    # ---- phase 3: hoisted output Linear for the WHOLE chunk ------------------
    hs = hs_scr[...].reshape(TC * B, H).astype(mm_dtype)
    out = (jnp.dot(hs, wlin_ref[...], preferred_element_type=jnp.float32)
           + blin_ref[...].astype(jnp.float32))
    out_ref[...] = out.reshape(TC, B, C_out).astype(out_ref.dtype)

    # ---- emit final hidden state on the last chunk ---------------------------
    @pl.when(c == n_chunks - 1)
    def _():
        hN_ref[0] = h_final.astype(hN_ref.dtype)


def gru_block_forward(x, h0, params, *, t_chunk=8, weight_dtype=jnp.float32):
    """x: (T, B, C_in), h0: (1, B, H). Returns (output (T,B,C_out), state (1,B,H))."""
    T, B, C_in = x.shape
    H = h0.shape[-1]
    C_out = params["w_lin"].shape[0]

    # Gate-split, transposed weights: (3, K, H), PyTorch gate order [r, z, n].
    w_ih_g = jnp.transpose(params["w_ih"].reshape(3, H, C_in), (0, 2, 1)).astype(weight_dtype)
    w_hh_g = jnp.transpose(params["w_hh"].reshape(3, H, H), (0, 2, 1)).astype(weight_dtype)
    b_ih_g = params["b_ih"].reshape(3, 1, H).astype(jnp.float32)
    b_hh_g = params["b_hh"].reshape(3, 1, H).astype(jnp.float32)
    w_lin_t = params["w_lin"].T.astype(weight_dtype)          # (H, C_out)
    b_lin = params["b_lin"].reshape(1, C_out).astype(jnp.float32)

    # Pad batch to a full sublane (8 rows): free in vreg terms, avoids
    # partial-row behavior and gives full-row recurrent matmuls.
    B_pad = max(8, ((B + 7) // 8) * 8)
    if B_pad != B:
        x = jnp.pad(x, ((0, 0), (0, B_pad - B), (0, 0)))
        h0 = jnp.pad(h0, ((0, 0), (0, B_pad - B), (0, 0)))

    # Time chunking: one grid step per chunk of t_chunk time steps.
    if T % t_chunk != 0:
        t_chunk = T   # TODO(synk): mask ragged tail chunks instead of falling back
    n_chunks = T // t_chunk

    def full(shape):
        nd = len(shape)
        return pl.BlockSpec(shape, lambda c: (0,) * nd)

    wbytes = jnp.dtype(weight_dtype).itemsize
    flops = 2 * T * B_pad * (C_in * 3 * H + H * 3 * H + H * C_out)
    transcendentals = 3 * T * B_pad * H
    bytes_accessed = ((T * B_pad * C_in + T * B_pad * C_out + 2 * B_pad * H) * 4
                      + (3 * C_in * H + 3 * H * H + H * C_out) * wbytes
                      + (3 * H * 2 + C_out) * 4)

    out_pad, hN_pad = pl.pallas_call(
        gru_block_kernel,
        out_shape=(
            jax.ShapeDtypeStruct((T, B_pad, C_out), x.dtype),
            jax.ShapeDtypeStruct((1, B_pad, H), x.dtype),
        ),
        grid_spec=pltpu.PrefetchScalarGridSpec(
            num_scalar_prefetch=0,
            grid=(n_chunks,),
            in_specs=[
                pl.BlockSpec((t_chunk, B_pad, C_in), lambda c: (c, 0, 0)),  # x chunk
                full((1, B_pad, H)),        # h0
                full((3, C_in, H)),         # gate-split W_ih^T
                full((3, H, H)),            # gate-split W_hh^T
                full((3, 1, H)),            # b_ih
                full((3, 1, H)),            # b_hh
                full((H, C_out)),           # W_lin^T
                full((1, C_out)),           # b_lin
            ],
            out_specs=[
                pl.BlockSpec((t_chunk, B_pad, C_out), lambda c: (c, 0, 0)),  # output chunk
                full((1, B_pad, H)),                                         # final state
            ],
            scratch_shapes=[
                pltpu.VMEM((B_pad, H), jnp.float32),            # carried h
                pltpu.VMEM((t_chunk, B_pad, H), jnp.float32),   # per-step hidden states
                pltpu.VMEM((t_chunk, B_pad, H), jnp.float32),   # gi_r (hoisted input proj)
                pltpu.VMEM((t_chunk, B_pad, H), jnp.float32),   # gi_z
                pltpu.VMEM((t_chunk, B_pad, H), jnp.float32),   # gi_n
            ],
        ),
        compiler_params=pltpu.CompilerParams(
            dimension_semantics=("arbitrary",)),   # time recurrence is sequential
        cost_estimate=pl.CostEstimate(
            flops=flops, transcendentals=transcendentals,
            bytes_accessed=bytes_accessed),
    )(x, h0, w_ih_g, w_hh_g, b_ih_g, b_hh_g, w_lin_t, b_lin)

    return out_pad[:, :B, :], hN_pad[:, :B, :]


def gru_block_reference(x, h0, params):
    """Pure-JAX reference matching torch.nn.GRU + nn.Linear semantics."""
    H = h0.shape[-1]
    w_ih, w_hh = params["w_ih"], params["w_hh"]
    b_ih, b_hh = params["b_ih"], params["b_hh"]

    def step(h, x_t):
        gi = x_t @ w_ih.T + b_ih
        gh = h @ w_hh.T + b_hh
        r = jax.nn.sigmoid(gi[:, :H] + gh[:, :H])
        z = jax.nn.sigmoid(gi[:, H:2 * H] + gh[:, H:2 * H])
        n = jnp.tanh(gi[:, 2 * H:] + r * gh[:, 2 * H:])
        h_new = (1.0 - z) * n + z * h
        return h_new, h_new

    hN, gru_out = jax.lax.scan(step, h0[0], x)
    out = gru_out @ params["w_lin"].T + params["b_lin"]
    return out, hN[None]


def init_params(key, in_channels, hidden_channels, out_channels):
    # Deterministic init mimicking PyTorch's uniform(-1/sqrt(H), 1/sqrt(H)).
    ks = jax.random.split(key, 6)
    kh = 1.0 / np.sqrt(hidden_channels)
    u = lambda k, shape, b: jax.random.uniform(k, shape, jnp.float32, -b, b)
    return {
        "w_ih": u(ks[0], (3 * hidden_channels, in_channels), kh),
        "w_hh": u(ks[1], (3 * hidden_channels, hidden_channels), kh),
        "b_ih": u(ks[2], (3 * hidden_channels,), kh),
        "b_hh": u(ks[3], (3 * hidden_channels,), kh),
        "w_lin": u(ks[4], (out_channels, hidden_channels), kh),
        "b_lin": u(ks[5], (out_channels,), kh),
    }


if __name__ == "__main__":
    T, B = 8, 2
    in_channels, hidden_channels, out_channels = 16, 32, 16

    key = jax.random.PRNGKey(0)
    kx, kh, kp = jax.random.split(key, 3)
    x = jax.random.normal(kx, (T, B, in_channels), jnp.float32)
    h0 = jax.random.normal(kh, (1, B, hidden_channels), jnp.float32)
    params = init_params(kp, in_channels, hidden_channels, out_channels)

    ref_out, ref_state = gru_block_reference(x, h0, params)

    # f32-weight path: tight check against the pure-JAX reference.
    out, state = jax.block_until_ready(jax.jit(gru_block_forward)(x, h0, params))
    np.testing.assert_allclose(np.asarray(out), np.asarray(ref_out), rtol=1e-5, atol=1e-5)
    np.testing.assert_allclose(np.asarray(state), np.asarray(ref_state), rtol=1e-5, atol=1e-5)

    # bf16-weight path (v6e/v7x MXU-friendly; f32 accumulation): loose check.
    fwd_bf16 = jax.jit(functools.partial(gru_block_forward, weight_dtype=jnp.bfloat16))
    out_bf, state_bf = jax.block_until_ready(fwd_bf16(x, h0, params))
    np.testing.assert_allclose(np.asarray(out_bf), np.asarray(ref_out), rtol=1e-1, atol=1e-1)
    np.testing.assert_allclose(np.asarray(state_bf), np.asarray(ref_state), rtol=1e-1, atol=1e-1)

    print("KERNEL_OK")
</pallas_src>

<mosaic_0001>
module attributes {stable_mosaic.version = 11 : i64} {
  func.func @gru_block_kernel(%arg0: i32, %arg1: memref<8x8x16xf32, #tpu.memory_space<vmem>>, %arg2: memref<1x8x32xf32, #tpu.memory_space<vmem>>, %arg3: memref<3x16x32xf32, #tpu.memory_space<vmem>>, %arg4: memref<3x32x32xf32, #tpu.memory_space<vmem>>, %arg5: memref<3x1x32xf32, #tpu.memory_space<vmem>>, %arg6: memref<3x1x32xf32, #tpu.memory_space<vmem>>, %arg7: memref<32x16xf32, #tpu.memory_space<vmem>>, %arg8: memref<1x16xf32, #tpu.memory_space<vmem>>, %arg9: memref<8x8x16xf32, #tpu.memory_space<vmem>>, %arg10: memref<1x8x32xf32, #tpu.memory_space<vmem>>, %arg11: memref<8x32xf32, #tpu.memory_space<vmem>>, %arg12: memref<8x8x32xf32, #tpu.memory_space<vmem>>, %arg13: memref<8x8x32xf32, #tpu.memory_space<vmem>>, %arg14: memref<8x8x32xf32, #tpu.memory_space<vmem>>, %arg15: memref<8x8x32xf32, #tpu.memory_space<vmem>>) attributes {dimension_semantics = [#tpu.dimension_semantics<arbitrary>], iteration_bounds = array<i64: 1>, scalar_prefetch = 0 : i64, scratch_operands = 5 : i64, tpu.core_type = #tpu.core_type<tc>, window_params = [{transform_indices = @transform_0, window_bounds = array<i64: 8, 8, 16>}, {pipeline_mode = #tpu.pipeline_mode<synchronous>, transform_indices = @transform_1, window_bounds = array<i64: 1, 8, 32>}, {pipeline_mode = #tpu.pipeline_mode<synchronous>, transform_indices = @transform_2, window_bounds = array<i64: 3, 16, 32>}, {pipeline_mode = #tpu.pipeline_mode<synchronous>, transform_indices = @transform_3, window_bounds = array<i64: 3, 32, 32>}, {pipeline_mode = #tpu.pipeline_mode<synchronous>, transform_indices = @transform_4, window_bounds = array<i64: 3, 1, 32>}, {pipeline_mode = #tpu.pipeline_mode<synchronous>, transform_indices = @transform_5, window_bounds = array<i64: 3, 1, 32>}, {pipeline_mode = #tpu.pipeline_mode<synchronous>, transform_indices = @transform_6, window_bounds = array<i64: 32, 16>}, {pipeline_mode = #tpu.pipeline_mode<synchronous>, transform_indices = @transform_7, window_bounds = array<i64: 1, 16>}, {transform_indices = @transform_8, window_bounds = array<i64: 8, 8, 16>}, {pipeline_mode = #tpu.pipeline_mode<synchronous>, transform_indices = @transform_9, window_bounds = array<i64: 1, 8, 32>}]} {
    %c0_i32 = arith.constant 0 : i32
    %0 = arith.cmpi eq, %arg0, %c0_i32 : i32
    %1 = arith.extui %0 : i1 to i32
    %c0_i32_0 = arith.constant 0 : i32
    %2 = arith.cmpi ne, %1, %c0_i32_0 : i32
    scf.if %2 {
      %c0_156 = arith.constant 0 : index
      %c0_157 = arith.constant 0 : index
      %c0_158 = arith.constant 0 : index
      %362 = vector.load %arg2[%c0_156, %c0_157, %c0_158] : memref<1x8x32xf32, #tpu.memory_space<vmem>>, vector<1x8x32xf32>
      %363 = vector.shape_cast %362 : vector<1x8x32xf32> to vector<8x32xf32>
      %c0_159 = arith.constant 0 : index
      %c0_160 = arith.constant 0 : index
      %364 = vector.load %arg11[%c0_159, %c0_160] : memref<8x32xf32, #tpu.memory_space<vmem>>, vector<8x32xf32>
      tpu.vector_store %arg11[%c0_159, %c0_160], %363 {strides = array<i32>} : memref<8x32xf32, #tpu.memory_space<vmem>>, vector<8x32xf32>,
    } else {
    }
    %c0 = arith.constant 0 : index
    %c0_1 = arith.constant 0 : index
    %c0_2 = arith.constant 0 : index
    %3 = vector.load %arg1[%c0, %c0_1, %c0_2] : memref<8x8x16xf32, #tpu.memory_space<vmem>>, vector<8x8x16xf32>
    %4 = vector.shape_cast %3 : vector<8x8x16xf32> to vector<64x16xf32>
    %c0_3 = arith.constant 0 : index
    %c0_4 = arith.constant 0 : index
    %c0_5 = arith.constant 0 : index
    %5 = vector.load %arg3[%c0_3, %c0_4, %c0_5] : memref<3x16x32xf32, #tpu.memory_space<vmem>>, vector<3x16x32xf32>
    %c0_6 = arith.constant 0 : index
    %c0_7 = arith.constant 0 : index
    %c0_8 = arith.constant 0 : index
    %6 = vector.load %arg5[%c0_6, %c0_7, %c0_8] : memref<3x1x32xf32, #tpu.memory_space<vmem>>, vector<3x1x32xf32>
    %c0_9 = arith.constant 0 : index
    %c0_10 = arith.constant 0 : index
    %c0_11 = arith.constant 0 : index
    %7 = vector.load %arg6[%c0_9, %c0_10, %c0_11] : memref<3x1x32xf32, #tpu.memory_space<vmem>>, vector<3x1x32xf32>
    %8 = vector.extract_strided_slice %5 {offsets = [0, 0, 0], sizes = [1, 16, 32], strides = [1, 1, 1]} : vector<3x16x32xf32> to vector<1x16x32xf32>
    %9 = vector.shape_cast %8 : vector<1x16x32xf32> to vector<16x32xf32>
    %cst = arith.constant dense<0.000000e+00> : vector<64x32xf32>
    %10 = tpu.matmul %4, %9, %cst {dimension_numbers = #tpu.dot_dimension_numbers<[1], [0], [0], [1], [0, 0, 1, 1], [], []>} : vector<64x16xf32>, vector<16x32xf32>, vector<64x32xf32> -> vector<64x32xf32>
    %11 = vector.extract_strided_slice %6 {offsets = [0, 0, 0], sizes = [1, 1, 32], strides = [1, 1, 1]} : vector<3x1x32xf32> to vector<1x1x32xf32>
    %12 = vector.shape_cast %11 : vector<1x1x32xf32> to vector<1x32xf32>
    %13 = vector.extract_strided_slice %7 {offsets = [0, 0, 0], sizes = [1, 1, 32], strides = [1, 1, 1]} : vector<3x1x32xf32> to vector<1x1x32xf32>
    %14 = vector.shape_cast %13 : vector<1x1x32xf32> to vector<1x32xf32>
    %15 = arith.addf %12, %14 : vector<1x32xf32>
    %16 = vector.broadcast %15 : vector<1x32xf32> to vector<64x32xf32>
    %17 = arith.addf %10, %16 : vector<64x32xf32>
    %18 = vector.shape_cast %17 : vector<64x32xf32> to vector<8x8x32xf32>
    %c0_12 = arith.constant 0 : index
    %c0_13 = arith.constant 0 : index
    %c0_14 = arith.constant 0 : index
    %19 = vector.load %arg13[%c0_12, %c0_13, %c0_14] : memref<8x8x32xf32, #tpu.memory_space<vmem>>, vector<8x8x32xf32>
    tpu.vector_store %arg13[%c0_12, %c0_13, %c0_14], %18 {strides = array<i32>} : memref<8x8x32xf32, #tpu.memory_space<vmem>>, vector<8x8x32xf32>,
    %20 = vector.extract_strided_slice %5 {offsets = [1, 0, 0], sizes = [1, 16, 32], strides = [1, 1, 1]} : vector<3x16x32xf32> to vector<1x16x32xf32>
    %21 = vector.shape_cast %20 : vector<1x16x32xf32> to vector<16x32xf32>
    %cst_15 = arith.constant dense<0.000000e+00> : vector<64x32xf32>
    %22 = tpu.matmul %4, %21, %cst_15 {dimension_numbers = #tpu.dot_dimension_numbers<[1], [0], [0], [1], [0, 0, 1, 1], [], []>} : vector<64x16xf32>, vector<16x32xf32>, vector<64x32xf32> -> vector<64x32xf32>
    %23 = vector.extract_strided_slice %6 {offsets = [1, 0, 0], sizes = [1, 1, 32], strides = [1, 1, 1]} : vector<3x1x32xf32> to vector<1x1x32xf32>
    %24 = vector.shape_cast %23 : vector<1x1x32xf32> to vector<1x32xf32>
    %25 = vector.extract_strided_slice %7 {offsets = [1, 0, 0], sizes = [1, 1, 32], strides = [1, 1, 1]} : vector<3x1x32xf32> to vector<1x1x32xf32>
    %26 = vector.shape_cast %25 : vector<1x1x32xf32> to vector<1x32xf32>
    %27 = arith.addf %24, %26 : vector<1x32xf32>
    %28 = vector.broadcast %27 : vector<1x32xf32> to vector<64x32xf32>
    %29 = arith.addf %22, %28 : vector<64x32xf32>
    %30 = vector.shape_cast %29 : vector<64x32xf32> to vector<8x8x32xf32>
    %c0_16 = arith.constant 0 : index
    %c0_17 = arith.constant 0 : index
    %c0_18 = arith.constant 0 : index
    %31 = vector.load %arg14[%c0_16, %c0_17, %c0_18] : memref<8x8x32xf32, #tpu.memory_space<vmem>>, vector<8x8x32xf32>
    tpu.vector_store %arg14[%c0_16, %c0_17, %c0_18], %30 {strides = array<i32>} : memref<8x8x32xf32, #tpu.memory_space<vmem>>, vector<8x8x32xf32>,
    %32 = vector.extract_strided_slice %5 {offsets = [2, 0, 0], sizes = [1, 16, 32], strides = [1, 1, 1]} : vector<3x16x32xf32> to vector<1x16x32xf32>
    %33 = vector.shape_cast %32 : vector<1x16x32xf32> to vector<16x32xf32>
    %cst_19 = arith.constant dense<0.000000e+00> : vector<64x32xf32>
    %34 = tpu.matmul %4, %33, %cst_19 {dimension_numbers = #tpu.dot_dimension_numbers<[1], [0], [0], [1], [0, 0, 1, 1], [], []>} : vector<64x16xf32>, vector<16x32xf32>, vector<64x32xf32> -> vector<64x32xf32>
    %35 = vector.extract_strided_slice %6 {offsets = [2, 0, 0], sizes = [1, 1, 32], strides = [1, 1, 1]} : vector<3x1x32xf32> to vector<1x1x32xf32>
    %36 = vector.shape_cast %35 : vector<1x1x32xf32> to vector<1x32xf32>
    %37 = vector.broadcast %36 : vector<1x32xf32> to vector<64x32xf32>
    %38 = arith.addf %34, %37 : vector<64x32xf32>
    %39 = vector.shape_cast %38 : vector<64x32xf32> to vector<8x8x32xf32>
    %c0_20 = arith.constant 0 : index
    %c0_21 = arith.constant 0 : index
    %c0_22 = arith.constant 0 : index
    %40 = vector.load %arg15[%c0_20, %c0_21, %c0_22] : memref<8x8x32xf32, #tpu.memory_space<vmem>>, vector<8x8x32xf32>
    tpu.vector_store %arg15[%c0_20, %c0_21, %c0_22], %39 {strides = array<i32>} : memref<8x8x32xf32, #tpu.memory_space<vmem>>, vector<8x8x32xf32>,
    %c0_23 = arith.constant 0 : index
    %c0_24 = arith.constant 0 : index
    %c0_25 = arith.constant 0 : index
    %41 = vector.load %arg4[%c0_23, %c0_24, %c0_25] : memref<3x32x32xf32, #tpu.memory_space<vmem>>, vector<3x32x32xf32>
    %42 = vector.extract_strided_slice %41 {offsets = [0, 0, 0], sizes = [1, 32, 32], strides = [1, 1, 1]} : vector<3x32x32xf32> to vector<1x32x32xf32>
    %43 = vector.shape_cast %42 : vector<1x32x32xf32> to vector<32x32xf32>
    %44 = vector.extract_strided_slice %41 {offsets = [1, 0, 0], sizes = [1, 32, 32], strides = [1, 1, 1]} : vector<3x32x32xf32> to vector<1x32x32xf32>
    %45 = vector.shape_cast %44 : vector<1x32x32xf32> to vector<32x32xf32>
    %46 = vector.extract_strided_slice %41 {offsets = [2, 0, 0], sizes = [1, 32, 32], strides = [1, 1, 1]} : vector<3x32x32xf32> to vector<1x32x32xf32>
    %47 = vector.shape_cast %46 : vector<1x32x32xf32> to vector<32x32xf32>
    %48 = vector.extract_strided_slice %7 {offsets = [2, 0, 0], sizes = [1, 1, 32], strides = [1, 1, 1]} : vector<3x1x32xf32> to vector<1x1x32xf32>
    %49 = vector.shape_cast %48 : vector<1x1x32xf32> to vector<1x32xf32>
    %50 = vector.shape_cast %49 : vector<1x32xf32> to vector<1x32xf32>
    %51 = vector.broadcast %50 : vector<1x32xf32> to vector<8x32xf32>
    %c0_26 = arith.constant 0 : index
    %c0_27 = arith.constant 0 : index
    %52 = vector.load %arg11[%c0_26, %c0_27] : memref<8x32xf32, #tpu.memory_space<vmem>>, vector<8x32xf32>
    %c0_i32_28 = arith.constant 0 : i32
    %cst_29 = arith.constant dense<0.000000e+00> : vector<8x32xf32>
    %53 = tpu.matmul %52, %43, %cst_29 {dimension_numbers = #tpu.dot_dimension_numbers<[1], [0], [0], [1], [0, 0, 1, 1], [], []>} : vector<8x32xf32>, vector<32x32xf32>, vector<8x32xf32> -> vector<8x32xf32>
    %cst_30 = arith.constant dense<0.000000e+00> : vector<8x32xf32>
    %54 = tpu.matmul %52, %45, %cst_30 {dimension_numbers = #tpu.dot_dimension_numbers<[1], [0], [0], [1], [0, 0, 1, 1], [], []>} : vector<8x32xf32>, vector<32x32xf32>, vector<8x32xf32> -> vector<8x32xf32>
    %cst_31 = arith.constant dense<0.000000e+00> : vector<8x32xf32>
    %55 = tpu.matmul %52, %47, %cst_31 {dimension_numbers = #tpu.dot_dimension_numbers<[1], [0], [0], [1], [0, 0, 1, 1], [], []>} : vector<8x32xf32>, vector<32x32xf32>, vector<8x32xf32> -> vector<8x32xf32>
    %56 = arith.addf %55, %51 : vector<8x32xf32>
    %57 = arith.index_cast %c0_i32_28 : i32 to index
    %c0_32 = arith.constant 0 : index
    %c0_33 = arith.constant 0 : index
    %58 = vector.load %arg13[%57, %c0_32, %c0_33] : memref<8x8x32xf32, #tpu.memory_space<vmem>>, vector<1x8x32xf32>
    %59 = vector.shape_cast %58 : vector<1x8x32xf32> to vector<8x32xf32>
    %60 = arith.addf %59, %53 : vector<8x32xf32>
    %61 = arith.negf %60 : vector<8x32xf32>
    %62 = math.exp %61 : vector<8x32xf32>
    %cst_34 = arith.constant 1.000000e+00 : f32
    %63 = vector.broadcast %cst_34 : f32 to vector<8x32xf32>
    %64 = arith.addf %63, %62 : vector<8x32xf32>
    %65 = arith.divf %63, %64 : vector<8x32xf32>
    %66 = arith.index_cast %c0_i32_28 : i32 to index
    %c0_35 = arith.constant 0 : index
    %c0_36 = arith.constant 0 : index
    %67 = vector.load %arg14[%66, %c0_35, %c0_36] : memref<8x8x32xf32, #tpu.memory_space<vmem>>, vector<1x8x32xf32>
    %68 = vector.shape_cast %67 : vector<1x8x32xf32> to vector<8x32xf32>
    %69 = arith.addf %68, %54 : vector<8x32xf32>
    %70 = arith.negf %69 : vector<8x32xf32>
    %71 = math.exp %70 : vector<8x32xf32>
    %cst_37 = arith.constant 1.000000e+00 : f32
    %72 = vector.broadcast %cst_37 : f32 to vector<8x32xf32>
    %73 = arith.addf %72, %71 : vector<8x32xf32>
    %74 = arith.divf %72, %73 : vector<8x32xf32>
    %75 = arith.index_cast %c0_i32_28 : i32 to index
    %c0_38 = arith.constant 0 : index
    %c0_39 = arith.constant 0 : index
    %76 = vector.load %arg15[%75, %c0_38, %c0_39] : memref<8x8x32xf32, #tpu.memory_space<vmem>>, vector<1x8x32xf32>
    %77 = vector.shape_cast %76 : vector<1x8x32xf32> to vector<8x32xf32>
    %78 = arith.mulf %65, %56 : vector<8x32xf32>
    %79 = arith.addf %77, %78 : vector<8x32xf32>
    %80 = math.tanh %79 : vector<8x32xf32>
    %cst_40 = arith.constant 1.000000e+00 : f32
    %81 = vector.broadcast %cst_40 : f32 to vector<8x32xf32>
    %82 = arith.subf %81, %74 : vector<8x32xf32>
    %83 = arith.mulf %82, %80 : vector<8x32xf32>
    %84 = arith.mulf %74, %52 : vector<8x32xf32>
    %85 = arith.addf %83, %84 : vector<8x32xf32>
    %86 = arith.index_cast %c0_i32_28 : i32 to index
    %c0_41 = arith.constant 0 : index
    %c0_42 = arith.constant 0 : index
    %87 = vector.load %arg12[%86, %c0_41, %c0_42] : memref<8x8x32xf32, #tpu.memory_space<vmem>>, vector<1x8x32xf32>
    %88 = vector.shape_cast %87 : vector<1x8x32xf32> to vector<8x32xf32>
    %89 = vector.shape_cast %85 : vector<8x32xf32> to vector<1x8x32xf32>
    tpu.vector_store %arg12[%86, %c0_41, %c0_42], %89 {strides = array<i32>} : memref<8x8x32xf32, #tpu.memory_space<vmem>>, vector<1x8x32xf32>,
    %c1_i32 = arith.constant 1 : i32
    %cst_43 = arith.constant dense<0.000000e+00> : vector<8x32xf32>
    %90 = tpu.matmul %85, %43, %cst_43 {dimension_numbers = #tpu.dot_dimension_numbers<[1], [0], [0], [1], [0, 0, 1, 1], [], []>} : vector<8x32xf32>, vector<32x32xf32>, vector<8x32xf32> -> vector<8x32xf32>
    %cst_44 = arith.constant dense<0.000000e+00> : vector<8x32xf32>
    %91 = tpu.matmul %85, %45, %cst_44 {dimension_numbers = #tpu.dot_dimension_numbers<[1], [0], [0], [1], [0, 0, 1, 1], [], []>} : vector<8x32xf32>, vector<32x32xf32>, vector<8x32xf32> -> vector<8x32xf32>
    %cst_45 = arith.constant dense<0.000000e+00> : vector<8x32xf32>
    %92 = tpu.matmul %85, %47, %cst_45 {dimension_numbers = #tpu.dot_dimension_numbers<[1], [0], [0], [1], [0, 0, 1, 1], [], []>} : vector<8x32xf32>, vector<32x32xf32>, vector<8x32xf32> -> vector<8x32xf32>
    %93 = arith.addf %92, %51 : vector<8x32xf32>
    %94 = arith.index_cast %c1_i32 : i32 to index
    %c0_46 = arith.constant 0 : index
    %c0_47 = arith.constant 0 : index
    %95 = vector.load %arg13[%94, %c0_46, %c0_47] : memref<8x8x32xf32, #tpu.memory_space<vmem>>, vector<1x8x32xf32>
    %96 = vector.shape_cast %95 : vector<1x8x32xf32> to vector<8x32xf32>
    %97 = arith.addf %96, %90 : vector<8x32xf32>
    %98 = arith.negf %97 : vector<8x32xf32>
    %99 = math.exp %98 : vector<8x32xf32>
    %cst_48 = arith.constant 1.000000e+00 : f32
    %100 = vector.broadcast %cst_48 : f32 to vector<8x32xf32>
    %101 = arith.addf %100, %99 : vector<8x32xf32>
    %102 = arith.divf %100, %101 : vector<8x32xf32>
    %103 = arith.index_cast %c1_i32 : i32 to index
    %c0_49 = arith.constant 0 : index
    %c0_50 = arith.constant 0 : index
    %104 = vector.load %arg14[%103, %c0_49, %c0_50] : memref<8x8x32xf32, #tpu.memory_space<vmem>>, vector<1x8x32xf32>
    %105 = vector.shape_cast %104 : vector<1x8x32xf32> to vector<8x32xf32>
    %106 = arith.addf %105, %91 : vector<8x32xf32>
    %107 = arith.negf %106 : vector<8x32xf32>
    %108 = math.exp %107 : vector<8x32xf32>
    %cst_51 = arith.constant 1.000000e+00 : f32
    %109 = vector.broadcast %cst_51 : f32 to vector<8x32xf32>
    %110 = arith.addf %109, %108 : vector<8x32xf32>
    %111 = arith.divf %109, %110 : vector<8x32xf32>
    %112 = arith.index_cast %c1_i32 : i32 to index
    %c0_52 = arith.constant 0 : index
    %c0_53 = arith.constant 0 : index
    %113 = vector.load %arg15[%112, %c0_52, %c0_53] : memref<8x8x32xf32, #tpu.memory_space<vmem>>, vector<1x8x32xf32>
    %114 = vector.shape_cast %113 : vector<1x8x32xf32> to vector<8x32xf32>
    %115 = arith.mulf %102, %93 : vector<8x32xf32>
    %116 = arith.addf %114, %115 : vector<8x32xf32>
    %117 = math.tanh %116 : vector<8x32xf32>
    %cst_54 = arith.constant 1.000000e+00 : f32
    %118 = vector.broadcast %cst_54 : f32 to vector<8x32xf32>
    %119 = arith.subf %118, %111 : vector<8x32xf32>
    %120 = arith.mulf %119, %117 : vector<8x32xf32>
    %121 = arith.mulf %111, %85 : vector<8x32xf32>
    %122 = arith.addf %120, %121 : vector<8x32xf32>
    %123 = arith.index_cast %c1_i32 : i32 to index
    %c0_55 = arith.constant 0 : index
    %c0_56 = arith.constant 0 : index
    %124 = vector.load %arg12[%123, %c0_55, %c0_56] : memref<8x8x32xf32, #tpu.memory_space<vmem>>, vector<1x8x32xf32>
    %125 = vector.shape_cast %124 : vector<1x8x32xf32> to vector<8x32xf32>
    %126 = vector.shape_cast %122 : vector<8x32xf32> to vector<1x8x32xf32>
    tpu.vector_store %arg12[%123, %c0_55, %c0_56], %126 {strides = array<i32>} : memref<8x8x32xf32, #tpu.memory_space<vmem>>, vector<1x8x32xf32>,
    %c2_i32 = arith.constant 2 : i32
    %cst_57 = arith.constant dense<0.000000e+00> : vector<8x32xf32>
    %127 = tpu.matmul %122, %43, %cst_57 {dimension_numbers = #tpu.dot_dimension_numbers<[1], [0], [0], [1], [0, 0, 1, 1], [], []>} : vector<8x32xf32>, vector<32x32xf32>, vector<8x32xf32> -> vector<8x32xf32>
    %cst_58 = arith.constant dense<0.000000e+00> : vector<8x32xf32>
    %128 = tpu.matmul %122, %45, %cst_58 {dimension_numbers = #tpu.dot_dimension_numbers<[1], [0], [0], [1], [0, 0, 1, 1], [], []>} : vector<8x32xf32>, vector<32x32xf32>, vector<8x32xf32> -> vector<8x32xf32>
    %cst_59 = arith.constant dense<0.000000e+00> : vector<8x32xf32>
    %129 = tpu.matmul %122, %47, %cst_59 {dimension_numbers = #tpu.dot_dimension_numbers<[1], [0], [0], [1], [0, 0, 1, 1], [], []>} : vector<8x32xf32>, vector<32x32xf32>, vector<8x32xf32> -> vector<8x32xf32>
    %130 = arith.addf %129, %51 : vector<8x32xf32>
    %131 = arith.index_cast %c2_i32 : i32 to index
    %c0_60 = arith.constant 0 : index
    %c0_61 = arith.constant 0 : index
    %132 = vector.load %arg13[%131, %c0_60, %c0_61] : memref<8x8x32xf32, #tpu.memory_space<vmem>>, vector<1x8x32xf32>
    %133 = vector.shape_cast %132 : vector<1x8x32xf32> to vector<8x32xf32>
    %134 = arith.addf %133, %127 : vector<8x32xf32>
    %135 = arith.negf %134 : vector<8x32xf32>
    %136 = math.exp %135 : vector<8x32xf32>
    %cst_62 = arith.constant 1.000000e+00 : f32
    %137 = vector.broadcast %cst_62 : f32 to vector<8x32xf32>
    %138 = arith.addf %137, %136 : vector<8x32xf32>
    %139 = arith.divf %137, %138 : vector<8x32xf32>
    %140 = arith.index_cast %c2_i32 : i32 to index
    %c0_63 = arith.constant 0 : index
    %c0_64 = arith.constant 0 : index
    %141 = vector.load %arg14[%140, %c0_63, %c0_64] : memref<8x8x32xf32, #tpu.memory_space<vmem>>, vector<1x8x32xf32>
    %142 = vector.shape_cast %141 : vector<1x8x32xf32> to vector<8x32xf32>
    %143 = arith.addf %142, %128 : vector<8x32xf32>
    %144 = arith.negf %143 : vector<8x32xf32>
    %145 = math.exp %144 : vector<8x32xf32>
    %cst_65 = arith.constant 1.000000e+00 : f32
    %146 = vector.broadcast %cst_65 : f32 to vector<8x32xf32>
    %147 = arith.addf %146, %145 : vector<8x32xf32>
    %148 = arith.divf %146, %147 : vector<8x32xf32>
    %149 = arith.index_cast %c2_i32 : i32 to index
    %c0_66 = arith.constant 0 : index
    %c0_67 = arith.constant 0 : index
    %150 = vector.load %arg15[%149, %c0_66, %c0_67] : memref<8x8x32xf32, #tpu.memory_space<vmem>>, vector<1x8x32xf32>
    %151 = vector.shape_cast %150 : vector<1x8x32xf32> to vector<8x32xf32>
    %152 = arith.mulf %139, %130 : vector<8x32xf32>
    %153 = arith.addf %151, %152 : vector<8x32xf32>
    %154 = math.tanh %153 : vector<8x32xf32>
    %cst_68 = arith.constant 1.000000e+00 : f32
    %155 = vector.broadcast %cst_68 : f32 to vector<8x32xf32>
    %156 = arith.subf %155, %148 : vector<8x32xf32>
    %157 = arith.mulf %156, %154 : vector<8x32xf32>
    %158 = arith.mulf %148, %122 : vector<8x32xf32>
    %159 = arith.addf %157, %158 : vector<8x32xf32>
    %160 = arith.index_cast %c2_i32 : i32 to index
    %c0_69 = arith.constant 0 : index
    %c0_70 = arith.constant 0 : index
    %161 = vector.load %arg12[%160, %c0_69, %c0_70] : memref<8x8x32xf32, #tpu.memory_space<vmem>>, vector<1x8x32xf32>
    %162 = vector.shape_cast %161 : vector<1x8x32xf32> to vector<8x32xf32>
    %163 = vector.shape_cast %159 : vector<8x32xf32> to vector<1x8x32xf32>
    tpu.vector_store %arg12[%160, %c0_69, %c0_70], %163 {strides = array<i32>} : memref<8x8x32xf32, #tpu.memory_space<vmem>>, vector<1x8x32xf32>,
    %c3_i32 = arith.constant 3 : i32
    %cst_71 = arith.constant dense<0.000000e+00> : vector<8x32xf32>
    %164 = tpu.matmul %159, %43, %cst_71 {dimension_numbers = #tpu.dot_dimension_numbers<[1], [0], [0], [1], [0, 0, 1, 1], [], []>} : vector<8x32xf32>, vector<32x32xf32>, vector<8x32xf32> -> vector<8x32xf32>
    %cst_72 = arith.constant dense<0.000000e+00> : vector<8x32xf32>
    %165 = tpu.matmul %159, %45, %cst_72 {dimension_numbers = #tpu.dot_dimension_numbers<[1], [0], [0], [1], [0, 0, 1, 1], [], []>} : vector<8x32xf32>, vector<32x32xf32>, vector<8x32xf32> -> vector<8x32xf32>
    %cst_73 = arith.constant dense<0.000000e+00> : vector<8x32xf32>
    %166 = tpu.matmul %159, %47, %cst_73 {dimension_numbers = #tpu.dot_dimension_numbers<[1], [0], [0], [1], [0, 0, 1, 1], [], []>} : vector<8x32xf32>, vector<32x32xf32>, vector<8x32xf32> -> vector<8x32xf32>
    %167 = arith.addf %166, %51 : vector<8x32xf32>
    %168 = arith.index_cast %c3_i32 : i32 to index
    %c0_74 = arith.constant 0 : index
    %c0_75 = arith.constant 0 : index
    %169 = vector.load %arg13[%168, %c0_74, %c0_75] : memref<8x8x32xf32, #tpu.memory_space<vmem>>, vector<1x8x32xf32>
    %170 = vector.shape_cast %169 : vector<1x8x32xf32> to vector<8x32xf32>
    %171 = arith.addf %170, %164 : vector<8x32xf32>
    %172 = arith.negf %171 : vector<8x32xf32>
    %173 = math.exp %172 : vector<8x32xf32>
    %cst_76 = arith.constant 1.000000e+00 : f32
    %174 = vector.broadcast %cst_76 : f32 to vector<8x32xf32>
    %175 = arith.addf %174, %173 : vector<8x32xf32>
    %176 = arith.divf %174, %175 : vector<8x32xf32>
    %177 = arith.index_cast %c3_i32 : i32 to index
    %c0_77 = arith.constant 0 : index
    %c0_78 = arith.constant 0 : index
    %178 = vector.load %arg14[%177, %c0_77, %c0_78] : memref<8x8x32xf32, #tpu.memory_space<vmem>>, vector<1x8x32xf32>
    %179 = vector.shape_cast %178 : vector<1x8x32xf32> to vector<8x32xf32>
    %180 = arith.addf %179, %165 : vector<8x32xf32>
    %181 = arith.negf %180 : vector<8x32xf32>
    %182 = math.exp %181 : vector<8x32xf32>
    %cst_79 = arith.constant 1.000000e+00 : f32
    %183 = vector.broadcast %cst_79 : f32 to vector<8x32xf32>
    %184 = arith.addf %183, %182 : vector<8x32xf32>
    %185 = arith.divf %183, %184 : vector<8x32xf32>
    %186 = arith.index_cast %c3_i32 : i32 to index
    %c0_80 = arith.constant 0 : index
    %c0_81 = arith.constant 0 : index
    %187 = vector.load %arg15[%186, %c0_80, %c0_81] : memref<8x8x32xf32, #tpu.memory_space<vmem>>, vector<1x8x32xf32>
    %188 = vector.shape_cast %187 : vector<1x8x32xf32> to vector<8x32xf32>
    %189 = arith.mulf %176, %167 : vector<8x32xf32>
    %190 = arith.addf %188, %189 : vector<8x32xf32>
    %191 = math.tanh %190 : vector<8x32xf32>
    %cst_82 = arith.constant 1.000000e+00 : f32
    %192 = vector.broadcast %cst_82 : f32 to vector<8x32xf32>
    %193 = arith.subf %192, %185 : vector<8x32xf32>
    %194 = arith.mulf %193, %191 : vector<8x32xf32>
    %195 = arith.mulf %185, %159 : vector<8x32xf32>
    %196 = arith.addf %194, %195 : vector<8x32xf32>
    %197 = arith.index_cast %c3_i32 : i32 to index
    %c0_83 = arith.constant 0 : index
    %c0_84 = arith.constant 0 : index
    %198 = vector.load %arg12[%197, %c0_83, %c0_84] : memref<8x8x32xf32, #tpu.memory_space<vmem>>, vector<1x8x32xf32>
    %199 = vector.shape_cast %198 : vector<1x8x32xf32> to vector<8x32xf32>
    %200 = vector.shape_cast %196 : vector<8x32xf32> to vector<1x8x32xf32>
    tpu.vector_store %arg12[%197, %c0_83, %c0_84], %200 {strides = array<i32>} : memref<8x8x32xf32, #tpu.memory_space<vmem>>, vector<1x8x32xf32>,
    %c4_i32 = arith.constant 4 : i32
    %cst_85 = arith.constant dense<0.000000e+00> : vector<8x32xf32>
    %201 = tpu.matmul %196, %43, %cst_85 {dimension_numbers = #tpu.dot_dimension_numbers<[1], [0], [0], [1], [0, 0, 1, 1], [], []>} : vector<8x32xf32>, vector<32x32xf32>, vector<8x32xf32> -> vector<8x32xf32>
    %cst_86 = arith.constant dense<0.000000e+00> : vector<8x32xf32>
    %202 = tpu.matmul %196, %45, %cst_86 {dimension_numbers = #tpu.dot_dimension_numbers<[1], [0], [0], [1], [0, 0, 1, 1], [], []>} : vector<8x32xf32>, vector<32x32xf32>, vector<8x32xf32> -> vector<8x32xf32>
    %cst_87 = arith.constant dense<0.000000e+00> : vector<8x32xf32>
    %203 = tpu.matmul %196, %47, %cst_87 {dimension_numbers = #tpu.dot_dimension_numbers<[1], [0], [0], [1], [0, 0, 1, 1], [], []>} : vector<8x32xf32>, vector<32x32xf32>, vector<8x32xf32> -> vector<8x32xf32>
    %204 = arith.addf %203, %51 : vector<8x32xf32>
    %205 = arith.index_cast %c4_i32 : i32 to index
    %c0_88 = arith.constant 0 : index
    %c0_89 = arith.constant 0 : index
    %206 = vector.load %arg13[%205, %c0_88, %c0_89] : memref<8x8x32xf32, #tpu.memory_space<vmem>>, vector<1x8x32xf32>
    %207 = vector.shape_cast %206 : vector<1x8x32xf32> to vector<8x32xf32>
    %208 = arith.addf %207, %201 : vector<8x32xf32>
    %209 = arith.negf %208 : vector<8x32xf32>
    %210 = math.exp %209 : vector<8x32xf32>
    %cst_90 = arith.constant 1.000000e+00 : f32
    %211 = vector.broadcast %cst_90 : f32 to vector<8x32xf32>
    %212 = arith.addf %211, %210 : vector<8x32xf32>
    %213 = arith.divf %211, %212 : vector<8x32xf32>
    %214 = arith.index_cast %c4_i32 : i32 to index
    %c0_91 = arith.constant 0 : index
    %c0_92 = arith.constant 0 : index
    %215 = vector.load %arg14[%214, %c0_91, %c0_92] : memref<8x8x32xf32, #tpu.memory_space<vmem>>, vector<1x8x32xf32>
    %216 = vector.shape_cast %215 : vector<1x8x32xf32> to vector<8x32xf32>
    %217 = arith.addf %216, %202 : vector<8x32xf32>
    %218 = arith.negf %217 : vector<8x32xf32>
    %219 = math.exp %218 : vector<8x32xf32>
    %cst_93 = arith.constant 1.000000e+00 : f32
    %220 = vector.broadcast %cst_93 : f32 to vector<8x32xf32>
    %221 = arith.addf %220, %219 : vector<8x32xf32>
    %222 = arith.divf %220, %221 : vector<8x32xf32>
    %223 = arith.index_cast %c4_i32 : i32 to index
    %c0_94 = arith.constant 0 : index
    %c0_95 = arith.constant 0 : index
    %224 = vector.load %arg15[%223, %c0_94, %c0_95] : memref<8x8x32xf32, #tpu.memory_space<vmem>>, vector<1x8x32xf32>
    %225 = vector.shape_cast %224 : vector<1x8x32xf32> to vector<8x32xf32>
    %226 = arith.mulf %213, %204 : vector<8x32xf32>
    %227 = arith.addf %225, %226 : vector<8x32xf32>
    %228 = math.tanh %227 : vector<8x32xf32>
    %cst_96 = arith.constant 1.000000e+00 : f32
    %229 = vector.broadcast %cst_96 : f32 to vector<8x32xf32>
    %230 = arith.subf %229, %222 : vector<8x32xf32>
    %231 = arith.mulf %230, %228 : vector<8x32xf32>
    %232 = arith.mulf %222, %196 : vector<8x32xf32>
    %233 = arith.addf %231, %232 : vector<8x32xf32>
    %234 = arith.index_cast %c4_i32 : i32 to index
    %c0_97 = arith.constant 0 : index
    %c0_98 = arith.constant 0 : index
    %235 = vector.load %arg12[%234, %c0_97, %c0_98] : memref<8x8x32xf32, #tpu.memory_space<vmem>>, vector<1x8x32xf32>
    %236 = vector.shape_cast %235 : vector<1x8x32xf32> to vector<8x32xf32>
    %237 = vector.shape_cast %233 : vector<8x32xf32> to vector<1x8x32xf32>
    tpu.vector_store %arg12[%234, %c0_97, %c0_98], %237 {strides = array<i32>} : memref<8x8x32xf32, #tpu.memory_space<vmem>>, vector<1x8x32xf32>,
    %c5_i32 = arith.constant 5 : i32
    %cst_99 = arith.constant dense<0.000000e+00> : vector<8x32xf32>
    %238 = tpu.matmul %233, %43, %cst_99 {dimension_numbers = #tpu.dot_dimension_numbers<[1], [0], [0], [1], [0, 0, 1, 1], [], []>} : vector<8x32xf32>, vector<32x32xf32>, vector<8x32xf32> -> vector<8x32xf32>
    %cst_100 = arith.constant dense<0.000000e+00> : vector<8x32xf32>
    %239 = tpu.matmul %233, %45, %cst_100 {dimension_numbers = #tpu.dot_dimension_numbers<[1], [0], [0], [1], [0, 0, 1, 1], [], []>} : vector<8x32xf32>, vector<32x32xf32>, vector<8x32xf32> -> vector<8x32xf32>
    %cst_101 = arith.constant dense<0.000000e+00> : vector<8x32xf32>
    %240 = tpu.matmul %233, %47, %cst_101 {dimension_numbers = #tpu.dot_dimension_numbers<[1], [0], [0], [1], [0, 0, 1, 1], [], []>} : vector<8x32xf32>, vector<32x32xf32>, vector<8x32xf32> -> vector<8x32xf32>
    %241 = arith.addf %240, %51 : vector<8x32xf32>
    %242 = arith.index_cast %c5_i32 : i32 to index
    %c0_102 = arith.constant 0 : index
    %c0_103 = arith.constant 0 : index
    %243 = vector.load %arg13[%242, %c0_102, %c0_103] : memref<8x8x32xf32, #tpu.memory_space<vmem>>, vector<1x8x32xf32>
    %244 = vector.shape_cast %243 : vector<1x8x32xf32> to vector<8x32xf32>
    %245 = arith.addf %244, %238 : vector<8x32xf32>
    %246 = arith.negf %245 : vector<8x32xf32>
    %247 = math.exp %246 : vector<8x32xf32>
    %cst_104 = arith.constant 1.000000e+00 : f32
    %248 = vector.broadcast %cst_104 : f32 to vector<8x32xf32>
    %249 = arith.addf %248, %247 : vector<8x32xf32>
    %250 = arith.divf %248, %249 : vector<8x32xf32>
    %251 = arith.index_cast %c5_i32 : i32 to index
    %c0_105 = arith.constant 0 : index
    %c0_106 = arith.constant 0 : index
    %252 = vector.load %arg14[%251, %c0_105, %c0_106] : memref<8x8x32xf32, #tpu.memory_space<vmem>>, vector<1x8x32xf32>
    %253 = vector.shape_cast %252 : vector<1x8x32xf32> to vector<8x32xf32>
    %254 = arith.addf %253, %239 : vector<8x32xf32>
    %255 = arith.negf %254 : vector<8x32xf32>
    %256 = math.exp %255 : vector<8x32xf32>
    %cst_107 = arith.constant 1.000000e+00 : f32
    %257 = vector.broadcast %cst_107 : f32 to vector<8x32xf32>
    %258 = arith.addf %257, %256 : vector<8x32xf32>
    %259 = arith.divf %257, %258 : vector<8x32xf32>
    %260 = arith.index_cast %c5_i32 : i32 to index
    %c0_108 = arith.constant 0 : index
    %c0_109 = arith.constant 0 : index
    %261 = vector.load %arg15[%260, %c0_108, %c0_109] : memref<8x8x32xf32, #tpu.memory_space<vmem>>, vector<1x8x32xf32>
    %262 = vector.shape_cast %261 : vector<1x8x32xf32> to vector<8x32xf32>
    %263 = arith.mulf %250, %241 : vector<8x32xf32>
    %264 = arith.addf %262, %263 : vector<8x32xf32>
    %265 = math.tanh %264 : vector<8x32xf32>
    %cst_110 = arith.constant 1.000000e+00 : f32
    %266 = vector.broadcast %cst_110 : f32 to vector<8x32xf32>
    %267 = arith.subf %266, %259 : vector<8x32xf32>
    %268 = arith.mulf %267, %265 : vector<8x32xf32>
    %269 = arith.mulf %259, %233 : vector<8x32xf32>
    %270 = arith.addf %268, %269 : vector<8x32xf32>
    %271 = arith.index_cast %c5_i32 : i32 to index
    %c0_111 = arith.constant 0 : index
    %c0_112 = arith.constant 0 : index
    %272 = vector.load %arg12[%271, %c0_111, %c0_112] : memref<8x8x32xf32, #tpu.memory_space<vmem>>, vector<1x8x32xf32>
    %273 = vector.shape_cast %272 : vector<1x8x32xf32> to vector<8x32xf32>
    %274 = vector.shape_cast %270 : vector<8x32xf32> to vector<1x8x32xf32>
    tpu.vector_store %arg12[%271, %c0_111, %c0_112], %274 {strides = array<i32>} : memref<8x8x32xf32, #tpu.memory_space<vmem>>, vector<1x8x32xf32>,
    %c6_i32 = arith.constant 6 : i32
    %cst_113 = arith.constant dense<0.000000e+00> : vector<8x32xf32>
    %275 = tpu.matmul %270, %43, %cst_113 {dimension_numbers = #tpu.dot_dimension_numbers<[1], [0], [0], [1], [0, 0, 1, 1], [], []>} : vector<8x32xf32>, vector<32x32xf32>, vector<8x32xf32> -> vector<8x32xf32>
    %cst_114 = arith.constant dense<0.000000e+00> : vector<8x32xf32>
    %276 = tpu.matmul %270, %45, %cst_114 {dimension_numbers = #tpu.dot_dimension_numbers<[1], [0], [0], [1], [0, 0, 1, 1], [], []>} : vector<8x32xf32>, vector<32x32xf32>, vector<8x32xf32> -> vector<8x32xf32>
    %cst_115 = arith.constant dense<0.000000e+00> : vector<8x32xf32>
    %277 = tpu.matmul %270, %47, %cst_115 {dimension_numbers = #tpu.dot_dimension_numbers<[1], [0], [0], [1], [0, 0, 1, 1], [], []>} : vector<8x32xf32>, vector<32x32xf32>, vector<8x32xf32> -> vector<8x32xf32>
    %278 = arith.addf %277, %51 : vector<8x32xf32>
    %279 = arith.index_cast %c6_i32 : i32 to index
    %c0_116 = arith.constant 0 : index
    %c0_117 = arith.constant 0 : index
    %280 = vector.load %arg13[%279, %c0_116, %c0_117] : memref<8x8x32xf32, #tpu.memory_space<vmem>>, vector<1x8x32xf32>
    %281 = vector.shape_cast %280 : vector<1x8x32xf32> to vector<8x32xf32>
    %282 = arith.addf %281, %275 : vector<8x32xf32>
    %283 = arith.negf %282 : vector<8x32xf32>
    %284 = math.exp %283 : vector<8x32xf32>
    %cst_118 = arith.constant 1.000000e+00 : f32
    %285 = vector.broadcast %cst_118 : f32 to vector<8x32xf32>
    %286 = arith.addf %285, %284 : vector<8x32xf32>
    %287 = arith.divf %285, %286 : vector<8x32xf32>
    %288 = arith.index_cast %c6_i32 : i32 to index
    %c0_119 = arith.constant 0 : index
    %c0_120 = arith.constant 0 : index
    %289 = vector.load %arg14[%288, %c0_119, %c0_120] : memref<8x8x32xf32, #tpu.memory_space<vmem>>, vector<1x8x32xf32>
    %290 = vector.shape_cast %289 : vector<1x8x32xf32> to vector<8x32xf32>
    %291 = arith.addf %290, %276 : vector<8x32xf32>
    %292 = arith.negf %291 : vector<8x32xf32>
    %293 = math.exp %292 : vector<8x32xf32>
    %cst_121 = arith.constant 1.000000e+00 : f32
    %294 = vector.broadcast %cst_121 : f32 to vector<8x32xf32>
    %295 = arith.addf %294, %293 : vector<8x32xf32>
    %296 = arith.divf %294, %295 : vector<8x32xf32>
    %297 = arith.index_cast %c6_i32 : i32 to index
    %c0_122 = arith.constant 0 : index
    %c0_123 = arith.constant 0 : index
    %298 = vector.load %arg15[%297, %c0_122, %c0_123] : memref<8x8x32xf32, #tpu.memory_space<vmem>>, vector<1x8x32xf32>
    %299 = vector.shape_cast %298 : vector<1x8x32xf32> to vector<8x32xf32>
    %300 = arith.mulf %287, %278 : vector<8x32xf32>
    %301 = arith.addf %299, %300 : vector<8x32xf32>
    %302 = math.tanh %301 : vector<8x32xf32>
    %cst_124 = arith.constant 1.000000e+00 : f32
    %303 = vector.broadcast %cst_124 : f32 to vector<8x32xf32>
    %304 = arith.subf %303, %296 : vector<8x32xf32>
    %305 = arith.mulf %304, %302 : vector<8x32xf32>
    %306 = arith.mulf %296, %270 : vector<8x32xf32>
    %307 = arith.addf %305, %306 : vector<8x32xf32>
    %308 = arith.index_cast %c6_i32 : i32 to index
    %c0_125 = arith.constant 0 : index
    %c0_126 = arith.constant 0 : index
    %309 = vector.load %arg12[%308, %c0_125, %c0_126] : memref<8x8x32xf32, #tpu.memory_space<vmem>>, vector<1x8x32xf32>
    %310 = vector.shape_cast %309 : vector<1x8x32xf32> to vector<8x32xf32>
    %311 = vector.shape_cast %307 : vector<8x32xf32> to vector<1x8x32xf32>
    tpu.vector_store %arg12[%308, %c0_125, %c0_126], %311 {strides = array<i32>} : memref<8x8x32xf32, #tpu.memory_space<vmem>>, vector<1x8x32xf32>,
    %c7_i32 = arith.constant 7 : i32
    %cst_127 = arith.constant dense<0.000000e+00> : vector<8x32xf32>
    %312 = tpu.matmul %307, %43, %cst_127 {dimension_numbers = #tpu.dot_dimension_numbers<[1], [0], [0], [1], [0, 0, 1, 1], [], []>} : vector<8x32xf32>, vector<32x32xf32>, vector<8x32xf32> -> vector<8x32xf32>
    %cst_128 = arith.constant dense<0.000000e+00> : vector<8x32xf32>
    %313 = tpu.matmul %307, %45, %cst_128 {dimension_numbers = #tpu.dot_dimension_numbers<[1], [0], [0], [1], [0, 0, 1, 1], [], []>} : vector<8x32xf32>, vector<32x32xf32>, vector<8x32xf32> -> vector<8x32xf32>
    %cst_129 = arith.constant dense<0.000000e+00> : vector<8x32xf32>
    %314 = tpu.matmul %307, %47, %cst_129 {dimension_numbers = #tpu.dot_dimension_numbers<[1], [0], [0], [1], [0, 0, 1, 1], [], []>} : vector<8x32xf32>, vector<32x32xf32>, vector<8x32xf32> -> vector<8x32xf32>
    %315 = arith.addf %314, %51 : vector<8x32xf32>
    %316 = arith.index_cast %c7_i32 : i32 to index
    %c0_130 = arith.constant 0 : index
    %c0_131 = arith.constant 0 : index
    %317 = vector.load %arg13[%316, %c0_130, %c0_131] : memref<8x8x32xf32, #tpu.memory_space<vmem>>, vector<1x8x32xf32>
    %318 = vector.shape_cast %317 : vector<1x8x32xf32> to vector<8x32xf32>
    %319 = arith.addf %318, %312 : vector<8x32xf32>
    %320 = arith.negf %319 : vector<8x32xf32>
    %321 = math.exp %320 : vector<8x32xf32>
    %cst_132 = arith.constant 1.000000e+00 : f32
    %322 = vector.broadcast %cst_132 : f32 to vector<8x32xf32>
    %323 = arith.addf %322, %321 : vector<8x32xf32>
    %324 = arith.divf %322, %323 : vector<8x32xf32>
    %325 = arith.index_cast %c7_i32 : i32 to index
    %c0_133 = arith.constant 0 : index
    %c0_134 = arith.constant 0 : index
    %326 = vector.load %arg14[%325, %c0_133, %c0_134] : memref<8x8x32xf32, #tpu.memory_space<vmem>>, vector<1x8x32xf32>
    %327 = vector.shape_cast %326 : vector<1x8x32xf32> to vector<8x32xf32>
    %328 = arith.addf %327, %313 : vector<8x32xf32>
    %329 = arith.negf %328 : vector<8x32xf32>
    %330 = math.exp %329 : vector<8x32xf32>
    %cst_135 = arith.constant 1.000000e+00 : f32
    %331 = vector.broadcast %cst_135 : f32 to vector<8x32xf32>
    %332 = arith.addf %331, %330 : vector<8x32xf32>
    %333 = arith.divf %331, %332 : vector<8x32xf32>
    %334 = arith.index_cast %c7_i32 : i32 to index
    %c0_136 = arith.constant 0 : index
    %c0_137 = arith.constant 0 : index
    %335 = vector.load %arg15[%334, %c0_136, %c0_137] : memref<8x8x32xf32, #tpu.memory_space<vmem>>, vector<1x8x32xf32>
    %336 = vector.shape_cast %335 : vector<1x8x32xf32> to vector<8x32xf32>
    %337 = arith.mulf %324, %315 : vector<8x32xf32>
    %338 = arith.addf %336, %337 : vector<8x32xf32>
    %339 = math.tanh %338 : vector<8x32xf32>
    %cst_138 = arith.constant 1.000000e+00 : f32
    %340 = vector.broadcast %cst_138 : f32 to vector<8x32xf32>
    %341 = arith.subf %340, %333 : vector<8x32xf32>
    %342 = arith.mulf %341, %339 : vector<8x32xf32>
    %343 = arith.mulf %333, %307 : vector<8x32xf32>
    %344 = arith.addf %342, %343 : vector<8x32xf32>
    %345 = arith.index_cast %c7_i32 : i32 to index
    %c0_139 = arith.constant 0 : index
    %c0_140 = arith.constant 0 : index
    %346 = vector.load %arg12[%345, %c0_139, %c0_140] : memref<8x8x32xf32, #tpu.memory_space<vmem>>, vector<1x8x32xf32>
    %347 = vector.shape_cast %346 : vector<1x8x32xf32> to vector<8x32xf32>
    %348 = vector.shape_cast %344 : vector<8x32xf32> to vector<1x8x32xf32>
    tpu.vector_store %arg12[%345, %c0_139, %c0_140], %348 {strides = array<i32>} : memref<8x8x32xf32, #tpu.memory_space<vmem>>, vector<1x8x32xf32>,
    %c8_i32 = arith.constant 8 : i32
    %c0_141 = arith.constant 0 : index
    %c0_142 = arith.constant 0 : index
    %349 = vector.load %arg11[%c0_141, %c0_142] : memref<8x32xf32, #tpu.memory_space<vmem>>, vector<8x32xf32>
    tpu.vector_store %arg11[%c0_141, %c0_142], %344 {strides = array<i32>} : memref<8x32xf32, #tpu.memory_space<vmem>>, vector<8x32xf32>,
    %c0_143 = arith.constant 0 : index
    %c0_144 = arith.constant 0 : index
    %c0_145 = arith.constant 0 : index
    %350 = vector.load %arg12[%c0_143, %c0_144, %c0_145] : memref<8x8x32xf32, #tpu.memory_space<vmem>>, vector<8x8x32xf32>
    %351 = vector.shape_cast %350 : vector<8x8x32xf32> to vector<64x32xf32>
    %c0_146 = arith.constant 0 : index
    %c0_147 = arith.constant 0 : index
    %352 = vector.load %arg7[%c0_146, %c0_147] : memref<32x16xf32, #tpu.memory_space<vmem>>, vector<32x16xf32>
    %cst_148 = arith.constant dense<0.000000e+00> : vector<64x16xf32>
    %353 = tpu.matmul %351, %352, %cst_148 {dimension_numbers = #tpu.dot_dimension_numbers<[1], [0], [0], [1], [0, 0, 1, 1], [], []>} : vector<64x32xf32>, vector<32x16xf32>, vector<64x16xf32> -> vector<64x16xf32>
    %c0_149 = arith.constant 0 : index
    %c0_150 = arith.constant 0 : index
    %354 = vector.load %arg8[%c0_149, %c0_150] : memref<1x16xf32, #tpu.memory_space<vmem>>, vector<1x16xf32>
    %355 = vector.broadcast %354 : vector<1x16xf32> to vector<64x16xf32>
    %356 = arith.addf %353, %355 : vector<64x16xf32>
    %357 = vector.shape_cast %356 : vector<64x16xf32> to vector<8x8x16xf32>
    %c0_151 = arith.constant 0 : index
    %c0_152 = arith.constant 0 : index
    %c0_153 = arith.constant 0 : index
    %358 = vector.load %arg9[%c0_151, %c0_152, %c0_153] : memref<8x8x16xf32, #tpu.memory_space<vmem>>, vector<8x8x16xf32>
    tpu.vector_store %arg9[%c0_151, %c0_152, %c0_153], %357 {strides = array<i32>} : memref<8x8x16xf32, #tpu.memory_space<vmem>>, vector<8x8x16xf32>,
    %c0_i32_154 = arith.constant 0 : i32
    %359 = arith.cmpi eq, %arg0, %c0_i32_154 : i32
    %360 = arith.extui %359 : i1 to i32
    %c0_i32_155 = arith.constant 0 : i32
    %361 = arith.cmpi ne, %360, %c0_i32_155 : i32
    scf.if %361 {
      %c0_156 = arith.constant 0 : index
      %c0_157 = arith.constant 0 : index
      %c0_158 = arith.constant 0 : index
      %362 = vector.load %arg10[%c0_156, %c0_157, %c0_158] : memref<1x8x32xf32, #tpu.memory_space<vmem>>, vector<1x8x32xf32>
      %363 = vector.shape_cast %362 : vector<1x8x32xf32> to vector<8x32xf32>
      %364 = vector.shape_cast %344 : vector<8x32xf32> to vector<1x8x32xf32>
      tpu.vector_store %arg10[%c0_156, %c0_157, %c0_158], %364 {strides = array<i32>} : memref<1x8x32xf32, #tpu.memory_space<vmem>>, vector<1x8x32xf32>,
    } else {
    }
    return
  }
  func.func @transform_0(%arg0: i32) -> (i32, i32, i32) {
    %c0_i32 = arith.constant 0 : i32
    %c0_i32_0 = arith.constant 0 : i32
    %c0_i32_1 = arith.constant 0 : i32
    return %arg0, %c0_i32, %c0_i32_0 : i32, i32, i32
  }
  func.func @transform_1(%arg0: i32) -> (i32, i32, i32) {
    %c0_i32 = arith.constant 0 : i32
    %c0_i32_0 = arith.constant 0 : i32
    %c0_i32_1 = arith.constant 0 : i32
    %c0_i32_2 = arith.constant 0 : i32
    return %c0_i32, %c0_i32_0, %c0_i32_1 : i32, i32, i32
  }
  func.func @transform_2(%arg0: i32) -> (i32, i32, i32) {
    %c0_i32 = arith.constant 0 : i32
    %c0_i32_0 = arith.constant 0 : i32
    %c0_i32_1 = arith.constant 0 : i32
    %c0_i32_2 = arith.constant 0 : i32
    return %c0_i32, %c0_i32_0, %c0_i32_1 : i32, i32, i32
  }
  func.func @transform_3(%arg0: i32) -> (i32, i32, i32) {
    %c0_i32 = arith.constant 0 : i32
    %c0_i32_0 = arith.constant 0 : i32
    %c0_i32_1 = arith.constant 0 : i32
    %c0_i32_2 = arith.constant 0 : i32
    return %c0_i32, %c0_i32_0, %c0_i32_1 : i32, i32, i32
  }
  func.func @transform_4(%arg0: i32) -> (i32, i32, i32) {
    %c0_i32 = arith.constant 0 : i32
    %c0_i32_0 = arith.constant 0 : i32
    %c0_i32_1 = arith.constant 0 : i32
    %c0_i32_2 = arith.constant 0 : i32
    return %c0_i32, %c0_i32_0, %c0_i32_1 : i32, i32, i32
  }
  func.func @transform_5(%arg0: i32) -> (i32, i32, i32) {
    %c0_i32 = arith.constant 0 : i32
    %c0_i32_0 = arith.constant 0 : i32
    %c0_i32_1 = arith.constant 0 : i32
    %c0_i32_2 = arith.constant 0 : i32
    return %c0_i32, %c0_i32_0, %c0_i32_1 : i32, i32, i32
  }
  func.func @transform_6(%arg0: i32) -> (i32, i32) {
    %c0_i32 = arith.constant 0 : i32
    %c0_i32_0 = arith.constant 0 : i32
    %c0_i32_1 = arith.constant 0 : i32
    return %c0_i32, %c0_i32_0 : i32, i32
  }
  func.func @transform_7(%arg0: i32) -> (i32, i32) {
    %c0_i32 = arith.constant 0 : i32
    %c0_i32_0 = arith.constant 0 : i32
    %c0_i32_1 = arith.constant 0 : i32
    return %c0_i32, %c0_i32_0 : i32, i32
  }
  func.func @transform_8(%arg0: i32) -> (i32, i32, i32) {
    %c0_i32 = arith.constant 0 : i32
    %c0_i32_0 = arith.constant 0 : i32
    %c0_i32_1 = arith.constant 0 : i32
    return %arg0, %c0_i32, %c0_i32_0 : i32, i32, i32
  }
  func.func @transform_9(%arg0: i32) -> (i32, i32, i32) {
    %c0_i32 = arith.constant 0 : i32
    %c0_i32_0 = arith.constant 0 : i32
    %c0_i32_1 = arith.constant 0 : i32
    %c0_i32_2 = arith.constant 0 : i32
    return %c0_i32, %c0_i32_0, %c0_i32_1 : i32, i32, i32
  }
}

</mosaic_0001>

<bundles_post_ra>
// kernel: gru_block_forward.1
= control target key start
LH: loop header
LB: loop body
LE: loop exit
PB: predicated region body
PF: predicated region fallthrough
CT: control target
= control target key end

     0   :  { %vm65_vm0 = vcmask 130048   ;;  %vm36_vm1 = vcmask 261120   ;;  %v3226_v13 = vmov 0.0   ;;  %vm3227_vm2 = vmmov 0   ;;  %s3831_s2 = inlined_call_operand.vmem [shape: f32[3,16,32], index: 2, kind: input, shape index: {}]   ;;  %s3832_s0 = inlined_call_operand.vmem [shape: f32[8,8,16], index: 0, kind: input, shape index: {}]   ;;  %s3833_s1 = inlined_call_operand.vmem [shape: f32[1,8,32], index: 1, kind: input, shape index: {}]   ;;  %s3834_s3 = inlined_call_operand.vmem [shape: f32[3,32,32], index: 3, kind: input, shape index: {}]   ;;  %s3835_s4 = inlined_call_operand.vmem [shape: f32[3,1,32], index: 4, kind: input, shape index: {}]   ;;  %s3836_s5 = inlined_call_operand.vmem [shape: f32[3,1,32], index: 5, kind: input, shape index: {}]   ;;  %s3837_s6 = inlined_call_operand.vmem [shape: f32[32,16], index: 6, kind: input, shape index: {}]   ;;  %s3838_s7 = inlined_call_operand.vmem [shape: f32[1,16], index: 7, kind: input, shape index: {}]   ;;  %s3839_s8 = inlined_call_operand.vmem [shape: f32[8,8,16], index: 8, kind: output, shape index: {0}]   ;;  %s3840_s9 = inlined_call_operand.vmem [shape: f32[1,8,32], index: 9, kind: output, shape index: {1}]  }
   0x1   :  { %v47_v0 = vld [vmem:[%s3831_s2 + $0x8] sm:$0xff]  ;;  %v46_v1 = vld [vmem:[%s3831_s2] sm:$0xff]  ;;  %v40_v2 = vld [vmem:[%s3832_s0 + $0x10] sm:$0xff]  ;;  %v60_v29 = vlaneseq }
   0x2   :  { %3132 = vmatprep.subr.mxu1 %v47_v0  ;;  %2807 = vmatprep.mubr.msk.f32.mxu1 %vm65_vm0, %v40_v2  ;;  %v41_v3 = vld [vmem:[%s3832_s0 + $0x18] sm:$0xff]  ;;  %v42_v5 = vld [vmem:[%s3832_s0 + $0x20] sm:$0xff]  ;;  %v48_v6 = vld [vmem:[%s3831_s2 + $0x10] sm:$0xff] }
   0x3   :  { %3134 = vmatpush3.msra.mxu1 %v47_v0  ;;  %v49_v4 = vld [vmem:[%s3831_s2 + $0x18] sm:$0xff]  ;;  %2800 = vmatprep.subr.mxu0 %v47_v0  ;;  %v35_v7 = vld [vmem:[%s3833_s1] sm:$0xff]  ;;  %v43_v8 = vld [vmem:[%s3832_s0 + $0x28] sm:$0xff]  ;;  %v61_v30 = vshrl.u32 %v60_v29, 7 }
   0x4   :  { %3133 = vmatprep.subr.mxu1 %v46_v1  ;;  %2801 = vmatpush3.msra.mxu0 %v47_v0  ;;  %37 = vst.msk [vmem:[#allocation2] sm:$0xff] %vm36_vm1, %v35_v7  ;;  %v44_v9 = vld [vmem:[%s3832_s0 + $0x30] sm:$0xff]  ;;  %v38_v10 = vld [vmem:[%s3832_s0] sm:$0xff]  ;;  %v51_v11 = vld [vmem:[%s3831_s2 + $0x28] sm:$0xff] }
   0x5   :  { %3135 = vmatpush3.msra.mxu1 %v46_v1  ;;  %2802 = vmatprep.subr.mxu0 %v46_v1  ;;  %v39_v12 = vld [vmem:[%s3832_s0 + $0x8] sm:$0xff]  ;;  %v45_v14 = vld [vmem:[%s3832_s0 + $0x38] sm:$0xff]  ;;  %v50_v15 = vld [vmem:[%s3831_s2 + $0x20] sm:$0xff]  ;;  %v62_v34 = vsub.s32 0, %v61_v30 }
   0x6   :  { %2808 = vmatmul.mubr.msk.f32.vlgmr.msra.gmra.mxu1 %vm65_vm0, %v41_v3  ;;  %2816 = vmatprep.subr.mxu1 %v49_v4  ;;  %v3337_v16 = vld [vmem:[%s3834_s3 + $0x58] sm:$0xff]  ;;  %v3353_v18 = vld [vmem:[%s3834_s3 + $0x10] sm:$0xff]  ;;  %v3367_v20 = vld [vmem:[%s3834_s3 + $0x8] sm:$0xff] }
   0x7   :  { %2817 = vmatpush3.msra.mxu1 %v49_v4  ;;  %2810 = vmatprep.mubr.msk.f32.mxu1 %vm65_vm0, %v42_v5  ;;  %v3343_v17 = vld [vmem:[%s3834_s3 + $0x18] sm:$0xff]  ;;  %v3359_v19 = vld [vmem:[%s3834_s3 + $0x50] sm:$0xff]  ;;  %v3377_v21 = vld [vmem:[%s3834_s3] sm:$0xff] }
   0x8   :  { %2818 = vmatprep.subr.mxu1 %v48_v6  ;;  %2803 = vmatpush3.msra.mxu0 %v46_v1  ;;  %v3388_v22 = vld [vmem:[%s3834_s3 + $0x48] sm:$0xff]  ;;  %v3397_v23 = vld [vmem:[%s3834_s3 + $0x40] sm:$0xff]  ;;  %v3414_v25 = vld [vmem:[%s3834_s3 + $0x38] sm:$0xff] }
   0x9   :  { %2819 = vmatpush3.msra.mxu1 %v48_v6  ;;  %2804 = vmatprep.mubr.msk.f32.mxu0 %vm65_vm0, %v38_v10  ;;  %v3424_v26 = vld [vmem:[%s3834_s3 + $0x30] sm:$0xff]  ;;  %v3434_v27 = vld [vmem:[%s3834_s3 + $0x28] sm:$0xff]  ;;  %v3443_v28 = vld [vmem:[%s3834_s3 + $0x20] sm:$0xff] }
   0xa   :  { %2811 = vmatmul.mubr.msk.f32.gmra.mxu1 %vm65_vm0, %v43_v8  ;;  %2848 = vmatprep.subr.mxu1 %v3226_v13  ;;  %v52_v31 = vld [vmem:[%s3835_s4] sm:$0x1]  ;;  %v53_v39 = vld [vmem:[%s3835_s4 + $0x1] sm:$0x1]  ;;  %v2579_v52 = vld [vmem:[%s3835_s4 + $0x2] ss:$0 sm:$0xff] }
   0xb   :  { %2813 = vmatprep.mubr.msk.f32.mxu1 %vm65_vm0, %v44_v9  ;;  %2805 = vmatmul.mubr.msk.f32.vlgmr.msra.gmra.mxu0 %vm65_vm0, %v39_v12  ;;  %v3407_v24 = vld [vmem:[#allocation2] sm:$0xff] }
   0xc   :  { %2832 = vmatprep.subr.mxu0 %v51_v11  ;;  %2836 = vmatprep.mubr.msk.f32.mxu0 %vm65_vm0, %v38_v10  ;;  %v55_v32 = vld [vmem:[%s3836_s5] sm:$0x1]  ;;  %v56_v40 = vld [vmem:[%s3836_s5 + $0x1] sm:$0x1] }
   0xd   :  { %2833 = vmatpush3.msra.mxu0 %v51_v11  ;;  %v58_v33 = vadd.f32 %v55_v32, %v52_v31  ;;  %v204_v44 = vadd.f32 %v56_v40, %v53_v39 }
   0xe   :  { %2814 = vmatmul.mubr.msk.f32.gmra.mxu1 %vm65_vm0, %v45_v14  ;;  %2834 = vmatprep.subr.mxu0 %v50_v15 }
   0xf   :  { %2820 = vmatprep.mubr.msk.f32.mxu1 %vm65_vm0, %v38_v10  ;;  %2835 = vmatpush3.msra.mxu0 %v50_v15  ;;  %v63_v35 = vrot.slane %v58_v33, %v62_v34  ;;  %v209_v54 = vrot.slane %v204_v44, %v62_v34 }
  0x10   :  { %2837 = vmatmul.mubr.msk.f32.vlgmr.msra.gmra.mxu0 %vm65_vm0, %v39_v12  ;;  %2870 = vmatprep.subr.mxu0 %v3226_v13 }
  0x11   :  { %2871 = vmatpush3.msra.mxu0 %v3337_v16  ;;  %2839 = vmatprep.mubr.msk.f32.mxu0 %vm65_vm0, %v40_v2 }
  0x12   :  { %2821 = vmatmul.mubr.msk.f32.vlgmr.msra.gmra.mxu1 %vm65_vm0, %v39_v12  ;;  %2872 = vmatprep.subr.mxu0 %v3226_v13 }
  0x13   :  { %2849 = vmatpush3.msra.mxu1 %v3343_v17  ;;  %2823 = vmatprep.mubr.msk.f32.mxu1 %vm65_vm0, %v40_v2 }
  0x14   :  { %2850 = vmatprep.subr.mxu1 %v3226_v13  ;;  %2840 = vmatmul.mubr.msk.f32.gmra.mxu0 %vm65_vm0, %v41_v3 }
  0x15   :  { %2851 = vmatpush3.msra.mxu1 %v3353_v18  ;;  %2873 = vmatpush3.msra.mxu0 %v3359_v19 }
  0x16   :  { %2824 = vmatmul.mubr.msk.f32.gmra.mxu1 %vm65_vm0, %v41_v3  ;;  %2852 = vmatprep.subr.mxu1 %v3226_v13 }
  0x17   :  { %2826 = vmatprep.mubr.msk.f32.mxu1 %vm65_vm0, %v42_v5  ;;  %2853 = vmatpush3.msra.mxu1 %v3367_v20 }
  0x18   :  { %2854 = vmatprep.subr.mxu1 %v3226_v13  ;;  %2842 = vmatprep.mubr.msk.f32.mxu0 %vm65_vm0, %v42_v5 }
  0x19   :  { %2855 = vmatpush3.msra.mxu1 %v3377_v21  ;;  %2843 = vmatmul.mubr.msk.f32.gmra.mxu0 %vm65_vm0, %v43_v8 }
  0x1a   :  { %2827 = vmatmul.mubr.msk.f32.gmra.mxu1 %vm65_vm0, %v43_v8  ;;  %2859 = vmatprep.subr.mxu1 %v3226_v13 }
  0x1b   :  { %2829 = vmatprep.mubr.msk.f32.mxu1 %vm65_vm0, %v44_v9  ;;  %2874 = vmatprep.subr.mxu0 %v3226_v13 }
  0x1c   :  { %2875 = vmatpush3.msra.mxu0 %v3388_v22  ;;  %2845 = vmatprep.mubr.msk.f32.mxu0 %vm65_vm0, %v44_v9 }
  0x1d   :  { %2846 = vmatmul.mubr.msk.f32.gmra.mxu0 %vm65_vm0, %v45_v14  ;;  %2876 = vmatprep.subr.mxu0 %v3226_v13 }
  0x1e   :  { %2830 = vmatmul.mubr.msk.f32.gmra.mxu1 %vm65_vm0, %v45_v14  ;;  %2877 = vmatpush3.msra.mxu0 %v3397_v23 }
  0x1f   :  { %2856 = vmatprep.mubr.msk.f32.mxu1 %vm3227_vm2, %v3226_v13  ;;  %2878 = vmatprep.mubr.msk.f32.mxu0 %vm3227_vm2, %v3226_v13 }
  0x20   :  { %2892 = vmatprep.subr.mxu0 %v3226_v13 }
  0x21   :  { %2879 = vmatmul.mubr.msk.f32.vlgmr.msra.gmra.mxu0 %vm36_vm1, %v3407_v24 }
  0x22   :  { %2857 = vmatmul.mubr.msk.f32.vlgmr.msra.gmra.mxu1 %vm36_vm1, %v3407_v24  ;;  %2893 = vmatpush3.msra.mxu0 %v3414_v25 }
  0x23   :  { %2860 = vmatpush3.msra.mxu1 %v3414_v25  ;;  %2867 = vmatprep.mubr.msk.f32.mxu1 %vm3227_vm2, %v3226_v13 }
  0x24   :  { %2861 = vmatprep.subr.mxu1 %v3226_v13  ;;  %2894 = vmatprep.subr.mxu0 %v3226_v13 }
  0x25   :  { %2862 = vmatpush3.msra.mxu1 %v3424_v26  ;;  %2895 = vmatpush3.msra.mxu0 %v3424_v26 }
  0x26   :  { %2863 = vmatprep.subr.mxu1 %v3226_v13  ;;  %2896 = vmatprep.subr.mxu0 %v3226_v13 }
  0x27   :  { %2864 = vmatpush3.msra.mxu1 %v3434_v27  ;;  %2897 = vmatpush3.msra.mxu0 %v3434_v27 }
  0x28   :  { %2865 = vmatprep.subr.mxu1 %v3226_v13  ;;  %2898 = vmatprep.subr.mxu0 %v3226_v13 }
  0x29   :  { %2866 = vmatpush3.msra.mxu1 %v3443_v28  ;;  %2899 = vmatpush3.msra.mxu0 %v3443_v28 }
  0x2a   :  { %2868 = vmatmul.mubr.msk.f32.vlgmr.msra.gmra.mxu1 %vm36_vm1, %v3407_v24  ;;  %2881 = vmatprep.subr.mxu1 %v3226_v13 }
  0x2b   :  { %2882 = vmatpush3.msra.mxu1 %v3343_v17  ;;  %2889 = vmatprep.mubr.msk.f32.mxu1 %vm3227_vm2, %v3226_v13 }
  0x2c   :  { %2883 = vmatprep.subr.mxu1 %v3226_v13  ;;  %2900 = vmatprep.mubr.msk.f32.mxu0 %vm3227_vm2, %v3226_v13 }
  0x2d   :  { %2884 = vmatpush3.msra.mxu1 %v3353_v18  ;;  %2914 = vmatprep.subr.mxu0 %v3226_v13 }
  0x2e   :  { %2885 = vmatprep.subr.mxu1 %v3226_v13 }
  0x2f   :  { %2886 = vmatpush3.msra.mxu1 %v3367_v20 }
  0x30   :  { %2887 = vmatprep.subr.mxu1 %v3226_v13 }
  0x31   :  { %2888 = vmatpush3.msra.mxu1 %v3377_v21 }
  0x32   :  { %2903 = vmatprep.subr.mxu1 %v3226_v13 }
  0xc6   :  { %v2809_v36 = vpop.f32.mrf.mxu1 }
  0xc7   :  { %v172_v37 = vadd.f32 %v2809_v36, %v63_v35 }
  0xc8   :  { %v166_v38 = vpop.f32.mrf.mxu1 }
  0xc9   :  { %199 = vst.msk [vmem:[#allocation4 + $0x18] sm:$0xff] %vm36_vm1, %v172_v37  ;;  %v167_v41 = vadd.f32 %v166_v38, %v63_v35 }
  0xca   :  { %v2812_v42 = vpop.f32.mrf.mxu1 }
  0xcb   :  { %198 = vst.msk [vmem:[#allocation4 + $0x10] sm:$0xff] %vm36_vm1, %v167_v41  ;;  %v182_v43 = vadd.f32 %v2812_v42, %v63_v35  ;;  %v2806_v45 = vpop.f32.mrf.mxu0 }
  0xcc   :  { %v176_v46 = vpop.f32.mrf.mxu1  ;;  %v162_v47 = vadd.f32 %v2806_v45, %v63_v35 }
  0xcd   :  { %201 = vst.msk [vmem:[#allocation4 + $0x28] sm:$0xff] %vm36_vm1, %v182_v43  ;;  %v177_v48 = vadd.f32 %v176_v46, %v63_v35  ;;  %v156_v49 = vpop.f32.mrf.mxu0 }
  0xce   :  { %v2815_v50 = vpop.f32.mrf.mxu1  ;;  %197 = vst.msk [vmem:[#allocation4 + $0x8] sm:$0xff] %vm36_vm1, %v162_v47  ;;  %v157_v51 = vadd.f32 %v156_v49, %v63_v35 }
  0xcf   :  { %200 = vst.msk [vmem:[#allocation4 + $0x20] sm:$0xff] %vm36_vm1, %v177_v48  ;;  %v192_v53 = vadd.f32 %v2815_v50, %v63_v35 }
  0xd0   :  { %v186_v55 = vpop.f32.mrf.mxu1  ;;  %196 = vst.msk [vmem:[#allocation4] sm:$0xff] %vm36_vm1, %v157_v51  ;;  %v2838_v56 = vpop.f32.mrf.mxu0 }
  0xd1   :  { %203 = vst.msk [vmem:[#allocation4 + $0x38] sm:$0xff] %vm36_vm1, %v192_v53  ;;  %v187_v57 = vadd.f32 %v186_v55, %v63_v35  ;;  %v402_v58 = vadd.f32 %v2838_v56, %v2579_v52 }
  0xd2   :  { %v2822_v59 = vpop.f32.mrf.mxu1  ;;  %v396_v60 = vpop.f32.mrf.mxu0 }
  0xd3   :  { %202 = vst.msk [vmem:[#allocation4 + $0x30] sm:$0xff] %vm36_vm1, %v187_v57  ;;  %v283_v61 = vadd.f32 %v2822_v59, %v209_v54  ;;  %436 = vst.msk [vmem:[#allocation6 + $0x8] sm:$0xff] %vm36_vm1, %v402_v58  ;;  %v397_v62 = vadd.f32 %v2579_v52, %v396_v60 }
  0xd4   :  { %v277_v63 = vpop.f32.mrf.mxu1  ;;  %v2841_v0 = vpop.f32.mrf.mxu0 }
  0xd5   :  { %317 = vst.msk [vmem:[#allocation5 + $0x8] sm:$0xff] %vm36_vm1, %v283_v61  ;;  %v278_v1 = vadd.f32 %v277_v63, %v209_v54  ;;  %435 = vst.msk [vmem:[#allocation6] sm:$0xff] %vm36_vm1, %v397_v62  ;;  %v412_v2 = vadd.f32 %v2841_v0, %v2579_v52 }
  0xd6   :  { %v2825_v3 = vpop.f32.mrf.mxu1  ;;  %v406_v4 = vpop.f32.mrf.mxu0 }
  0xd7   :  { %316 = vst.msk [vmem:[#allocation5] sm:$0xff] %vm36_vm1, %v278_v1  ;;  %v293_v5 = vadd.f32 %v2825_v3, %v209_v54  ;;  %438 = vst.msk [vmem:[#allocation6 + $0x18] sm:$0xff] %vm36_vm1, %v412_v2  ;;  %v407_v6 = vadd.f32 %v2579_v52, %v406_v4  ;;  %v675_v41 = vld [vmem:[#allocation4] sm:$0xff]  ;;  %v914_v3 = vld [vmem:[#allocation4 + $0x8] sm:$0xff] }
  0xd8   :  { %v287_v7 = vpop.f32.mrf.mxu1 }
  0xd9   :  { %319 = vst.msk [vmem:[#allocation5 + $0x18] sm:$0xff] %vm36_vm1, %v293_v5  ;;  %v288_v8 = vadd.f32 %v287_v7, %v209_v54  ;;  %437 = vst.msk [vmem:[#allocation6 + $0x10] sm:$0xff] %vm36_vm1, %v407_v6  ;;  %v2844_v9 = vpop.f32.mrf.mxu0 }
  0xda   :  { %v2828_v10 = vpop.f32.mrf.mxu1  ;;  %v422_v11 = vadd.f32 %v2844_v9, %v2579_v52 }
  0xdb   :  { %318 = vst.msk [vmem:[#allocation5 + $0x10] sm:$0xff] %vm36_vm1, %v288_v8  ;;  %v303_v12 = vadd.f32 %v2828_v10, %v209_v54  ;;  %v416_v14 = vpop.f32.mrf.mxu0 }
  0xdc   :  { %v297_v15 = vpop.f32.mrf.mxu1  ;;  %440 = vst.msk [vmem:[#allocation6 + $0x28] sm:$0xff] %vm36_vm1, %v422_v11  ;;  %v417_v29 = vadd.f32 %v2579_v52, %v416_v14  ;;  %v691_v59 = vld [vmem:[#allocation6] sm:$0xff]  ;;  %v923_v9 = vld [vmem:[#allocation5 + $0x8] sm:$0xff] }
  0xdd   :  { %321 = vst.msk [vmem:[#allocation5 + $0x28] sm:$0xff] %vm36_vm1, %v303_v12  ;;  %v298_v30 = vadd.f32 %v297_v15, %v209_v54  ;;  %v2847_v31 = vpop.f32.mrf.mxu0 }
  0xde   :  { %v2831_v32 = vpop.f32.mrf.mxu1  ;;  %439 = vst.msk [vmem:[#allocation6 + $0x20] sm:$0xff] %vm36_vm1, %v417_v29  ;;  %v432_v33 = vadd.f32 %v2847_v31, %v2579_v52  ;;  %v683_v47 = vld [vmem:[#allocation5] sm:$0xff] }
  0xdf   :  { %320 = vst.msk [vmem:[#allocation5 + $0x20] sm:$0xff] %vm36_vm1, %v298_v30  ;;  %v313_v34 = vadd.f32 %v2831_v32, %v209_v54  ;;  %v426_v35 = vpop.f32.mrf.mxu0 }
  0xe0   :  { %v307_v36 = vpop.f32.mrf.mxu1  ;;  %442 = vst.msk [vmem:[#allocation6 + $0x38] sm:$0xff] %vm36_vm1, %v432_v33  ;;  %v427_v37 = vadd.f32 %v2579_v52, %v426_v35  ;;  %v932_v35 = vld [vmem:[#allocation6 + $0x8] sm:$0xff] }
  0xe1   :  { %323 = vst.msk [vmem:[#allocation5 + $0x38] sm:$0xff] %vm36_vm1, %v313_v34  ;;  %v308_v38 = vadd.f32 %v307_v36, %v209_v54  ;;  %v671_v39 = vpop.f32.mrf.mxu0  ;;  %v3510_v54 = vld [vmem:[%s3836_s5 + $0x2] ss:$0 sm:$0xff] }
  0xe2   :  { %v531_v40 = vpop.f32.mrf.mxu1  ;;  %441 = vst.msk [vmem:[#allocation6 + $0x30] sm:$0xff] %vm36_vm1, %v427_v37  ;;  %v672_v56 = vadd.f32 %v3510_v54, %v671_v39 }
  0xe3   :  { %322 = vst.msk [vmem:[#allocation5 + $0x30] sm:$0xff] %vm36_vm1, %v308_v38  ;;  %v676_v42 = vadd.f32 %v675_v41, %v531_v40  ;;  %v2880_v43 = vpop.f32.mrf.mxu0 }
  0xe4   :  { %v2858_v44 = vpop.f32.mrf.mxu1 }
  0xe5   :  { %v2592_v45 = vmul.f32 -1.442695, %v676_v42  ;;  %v1156_v44 = vld [vmem:[#allocation4 + $0x10] sm:$0xff] }
  0xe7   :  { %3138 = vpow2.f32 %v2592_v45 }
  0xea   :  { %v601_v46 = vpop.f32.mrf.mxu1 }
  0xeb   :  { %v684_v48 = vadd.f32 %v683_v47, %v601_v46 }
  0xec   :  { %v2869_v49 = vpop.f32.mrf.mxu1 }
  0xed   :  { %v2593_v50 = vmul.f32 -1.442695, %v684_v48 }
  0xef   :  { %3140 = vpow2.f32 %v2593_v50  ;;  %v1165_v50 = vld [vmem:[#allocation5 + $0x10] sm:$0xff] }
  0xf4   :  { %v3139_v51 = vpop.eup %3138 }
  0xf5   :  { %v680_v52 = vadd.f32 1.0, %v3139_v51 }
  0xf7   :  { %3142 = vrcp.f32 %v680_v52 }
  0xfc   :  { %v3141_v53 = vpop.eup %3140 }
  0xfd   :  { %v688_v55 = vadd.f32 1.0, %v3141_v53 }
  0xff   :  { %3144 = vrcp.f32 %v688_v55 }
 0x104   :  { %v3143_v57 = vpop.eup %3142 }
 0x105   :  { %v692_v58 = vmul.f32 %v3143_v57, %v672_v56 }
 0x107   :  { %v693_v60 = vadd.f32 %v692_v58, %v691_v59 }
 0x109   :  { %3146 = vtanh.f32 %v693_v60 }
 0x10c   :  { %v3145_v61 = vpop.eup %3144 }
 0x10d   :  { %v695_v62 = vsub.f32 1.0, %v3145_v61  ;;  %v697_v1 = vmul.f32 %v3145_v61, %v3407_v24 }
 0x116   :  { %v3147_v63 = vpop.eup %3146 }
 0x117   :  { %v696_v0 = vmul.f32 %v3147_v63, %v695_v62  ;;  %v1174_v63 = vld [vmem:[#allocation6 + $0x10] sm:$0xff] }
 0x119   :  { %v698_v2 = vadd.f32 %v697_v1, %v696_v0 }
 0x11b   :  { %699 = vst.msk [vmem:[#allocation3] sm:$0xff] %vm36_vm1, %v698_v2  ;;  %2890 = vmatmul.mubr.msk.f32.vlgmr.msra.gmra.mxu1 %vm36_vm1, %v698_v2  ;;  %2901 = vmatmul.mubr.msk.f32.vlgmr.msra.gmra.mxu0 %vm36_vm1, %v698_v2 }
 0x11c   :  { %2904 = vmatpush3.msra.mxu1 %v3337_v16  ;;  %2911 = vmatprep.mubr.msk.f32.mxu1 %vm3227_vm2, %v3226_v13 }
 0x11d   :  { %2905 = vmatprep.subr.mxu1 %v3226_v13  ;;  %2915 = vmatpush3.msra.mxu0 %v3343_v17 }
 0x11e   :  { %2906 = vmatpush3.msra.mxu1 %v3359_v19  ;;  %2916 = vmatprep.subr.mxu0 %v3226_v13 }
 0x11f   :  { %2907 = vmatprep.subr.mxu1 %v3226_v13  ;;  %2917 = vmatpush3.msra.mxu0 %v3353_v18 }
 0x120   :  { %2908 = vmatpush3.msra.mxu1 %v3388_v22  ;;  %2918 = vmatprep.subr.mxu0 %v3226_v13 }
 0x121   :  { %2909 = vmatprep.subr.mxu1 %v3226_v13  ;;  %2919 = vmatpush3.msra.mxu0 %v3367_v20 }
 0x122   :  { %2910 = vmatpush3.msra.mxu1 %v3397_v23  ;;  %2920 = vmatprep.subr.mxu0 %v3226_v13 }
 0x123   :  { %2912 = vmatmul.mubr.msk.f32.vlgmr.msra.gmra.mxu1 %vm36_vm1, %v698_v2  ;;  %2925 = vmatprep.subr.mxu1 %v3226_v13 }
 0x124   :  { %2926 = vmatpush3.msra.mxu1 %v3414_v25  ;;  %2921 = vmatpush3.msra.mxu0 %v3377_v21 }
 0x125   :  { %2927 = vmatprep.subr.mxu1 %v3226_v13  ;;  %2922 = vmatprep.mubr.msk.f32.mxu0 %vm3227_vm2, %v3226_v13 }
 0x126   :  { %2928 = vmatpush3.msra.mxu1 %v3424_v26  ;;  %2933 = vmatprep.mubr.msk.f32.mxu1 %vm3227_vm2, %v3226_v13 }
 0x127   :  { %2929 = vmatprep.subr.mxu1 %v3226_v13  ;;  %2936 = vmatprep.subr.mxu0 %v3226_v13 }
 0x128   :  { %2930 = vmatpush3.msra.mxu1 %v3434_v27 }
 0x129   :  { %2931 = vmatprep.subr.mxu1 %v3226_v13 }
 0x12a   :  { %2932 = vmatpush3.msra.mxu1 %v3443_v28 }
 0x12b   :  { %2947 = vmatprep.subr.mxu1 %v3226_v13 }
 0x1db   :  { %v769_v24 = vpop.f32.mrf.mxu1  ;;  %v839_v4 = vpop.f32.mrf.mxu0 }
 0x1dc   :  { %v915_v5 = vadd.f32 %v914_v3, %v769_v24  ;;  %v924_v10 = vadd.f32 %v923_v9, %v839_v4 }
 0x1dd   :  { %v2891_v6 = vpop.f32.mrf.mxu1  ;;  %v2902_v7 = vpop.f32.mrf.mxu0 }
 0x1de   :  { %v2597_v8 = vmul.f32 -1.442695, %v915_v5  ;;  %v2598_v14 = vmul.f32 -1.442695, %v924_v10  ;;  %v1398_v7 = vld [vmem:[#allocation4 + $0x18] sm:$0xff] }
 0x1e0   :  { %3148 = vpow2.f32 %v2597_v8 }
 0x1e1   :  { %3150 = vpow2.f32 %v2598_v14  ;;  %v1407_v14 = vld [vmem:[#allocation5 + $0x18] sm:$0xff] }
 0x1e3   :  { %v909_v11 = vpop.f32.mrf.mxu1 }
 0x1e4   :  { %v910_v32 = vadd.f32 %v3510_v54, %v909_v11 }
 0x1e5   :  { %v2913_v12 = vpop.f32.mrf.mxu1 }
 0x1ed   :  { %v3149_v15 = vpop.eup %3148 }
 0x1ee   :  { %v919_v29 = vadd.f32 1.0, %v3149_v15  ;;  %v3151_v30 = vpop.eup %3150 }
 0x1ef   :  { %v928_v31 = vadd.f32 1.0, %v3151_v30 }
 0x1f0   :  { %3152 = vrcp.f32 %v919_v29 }
 0x1f1   :  { %3154 = vrcp.f32 %v928_v31 }
 0x1fd   :  { %v3153_v33 = vpop.eup %3152 }
 0x1fe   :  { %v933_v34 = vmul.f32 %v3153_v33, %v910_v32  ;;  %v3155_v37 = vpop.eup %3154 }
 0x1ff   :  { %v936_v38 = vsub.f32 1.0, %v3155_v37  ;;  %v938_v41 = vmul.f32 %v3155_v37, %v698_v2 }
 0x200   :  { %v934_v36 = vadd.f32 %v933_v34, %v932_v35 }
 0x202   :  { %3156 = vtanh.f32 %v934_v36 }
 0x20f   :  { %v3157_v39 = vpop.eup %3156 }
 0x210   :  { %v937_v40 = vmul.f32 %v3157_v39, %v936_v38  ;;  %v1416_v39 = vld [vmem:[#allocation6 + $0x18] sm:$0xff] }
 0x212   :  { %v939_v42 = vadd.f32 %v938_v41, %v937_v40 }
 0x214   :  { %941 = vst.msk [vmem:[#allocation3 + $0x8] sm:$0xff] %vm36_vm1, %v939_v42  ;;  %2923 = vmatmul.mubr.msk.f32.vlgmr.msra.gmra.mxu0 %vm36_vm1, %v939_v42  ;;  %2934 = vmatmul.mubr.msk.f32.vlgmr.msra.gmra.mxu1 %vm36_vm1, %v939_v42 }
 0x215   :  { %2937 = vmatpush3.msra.mxu0 %v3337_v16  ;;  %2944 = vmatprep.mubr.msk.f32.mxu0 %vm3227_vm2, %v3226_v13 }
 0x216   :  { %2938 = vmatprep.subr.mxu0 %v3226_v13  ;;  %2948 = vmatpush3.msra.mxu1 %v3343_v17 }
 0x217   :  { %2939 = vmatpush3.msra.mxu0 %v3359_v19  ;;  %2949 = vmatprep.subr.mxu1 %v3226_v13 }
 0x218   :  { %2940 = vmatprep.subr.mxu0 %v3226_v13  ;;  %2950 = vmatpush3.msra.mxu1 %v3353_v18 }
 0x219   :  { %2941 = vmatpush3.msra.mxu0 %v3388_v22  ;;  %2951 = vmatprep.subr.mxu1 %v3226_v13 }
 0x21a   :  { %2942 = vmatprep.subr.mxu0 %v3226_v13  ;;  %2952 = vmatpush3.msra.mxu1 %v3367_v20 }
 0x21b   :  { %2943 = vmatpush3.msra.mxu0 %v3397_v23  ;;  %2953 = vmatprep.subr.mxu1 %v3226_v13 }
 0x21c   :  { %2945 = vmatmul.mubr.msk.f32.vlgmr.msra.gmra.mxu0 %vm36_vm1, %v939_v42  ;;  %2958 = vmatprep.subr.mxu0 %v3226_v13 }
 0x21d   :  { %2959 = vmatpush3.msra.mxu0 %v3414_v25  ;;  %2954 = vmatpush3.msra.mxu1 %v3377_v21 }
 0x21e   :  { %2960 = vmatprep.subr.mxu0 %v3226_v13  ;;  %2955 = vmatprep.mubr.msk.f32.mxu1 %vm3227_vm2, %v3226_v13 }
 0x21f   :  { %2961 = vmatpush3.msra.mxu0 %v3424_v26  ;;  %2966 = vmatprep.mubr.msk.f32.mxu0 %vm3227_vm2, %v3226_v13 }
 0x220   :  { %2962 = vmatprep.subr.mxu0 %v3226_v13  ;;  %2969 = vmatprep.subr.mxu1 %v3226_v13 }
 0x221   :  { %2963 = vmatpush3.msra.mxu0 %v3434_v27 }
 0x222   :  { %2964 = vmatprep.subr.mxu0 %v3226_v13 }
 0x223   :  { %2965 = vmatpush3.msra.mxu0 %v3443_v28 }
 0x224   :  { %2980 = vmatprep.subr.mxu0 %v3226_v13 }
 0x2d4   :  { %v1011_v43 = vpop.f32.mrf.mxu0  ;;  %v1081_v45 = vpop.f32.mrf.mxu1 }
 0x2d5   :  { %v1157_v46 = vadd.f32 %v1156_v44, %v1011_v43  ;;  %v1166_v51 = vadd.f32 %v1165_v50, %v1081_v45 }
 0x2d6   :  { %v2924_v47 = vpop.f32.mrf.mxu0  ;;  %v2935_v48 = vpop.f32.mrf.mxu1 }
 0x2d7   :  { %v2602_v49 = vmul.f32 -1.442695, %v1157_v46  ;;  %v2603_v55 = vmul.f32 -1.442695, %v1166_v51  ;;  %v1640_v48 = vld [vmem:[#allocation4 + $0x20] sm:$0xff] }
 0x2d9   :  { %3158 = vpow2.f32 %v2602_v49 }
 0x2da   :  { %3160 = vpow2.f32 %v2603_v55  ;;  %v1649_v55 = vld [vmem:[#allocation5 + $0x20] sm:$0xff] }
 0x2dc   :  { %v1151_v52 = vpop.f32.mrf.mxu0 }
 0x2dd   :  { %v1152_v60 = vadd.f32 %v3510_v54, %v1151_v52 }
 0x2de   :  { %v2946_v53 = vpop.f32.mrf.mxu0 }
 0x2e6   :  { %v3159_v56 = vpop.eup %3158 }
 0x2e7   :  { %v1161_v57 = vadd.f32 1.0, %v3159_v56  ;;  %v3161_v58 = vpop.eup %3160 }
 0x2e8   :  { %v1170_v59 = vadd.f32 1.0, %v3161_v58 }
 0x2e9   :  { %3162 = vrcp.f32 %v1161_v57 }
 0x2ea   :  { %3164 = vrcp.f32 %v1170_v59 }
 0x2f6   :  { %v3163_v61 = vpop.eup %3162 }
 0x2f7   :  { %v1175_v62 = vmul.f32 %v3163_v61, %v1152_v60  ;;  %v3165_v1 = vpop.eup %3164 }
 0x2f8   :  { %v1178_v2 = vsub.f32 1.0, %v3165_v1  ;;  %v1180_v4 = vmul.f32 %v3165_v1, %v939_v42 }
 0x2f9   :  { %v1176_v0 = vadd.f32 %v1175_v62, %v1174_v63 }
 0x2fb   :  { %3166 = vtanh.f32 %v1176_v0 }
 0x308   :  { %v3167_v24 = vpop.eup %3166 }
 0x309   :  { %v1179_v3 = vmul.f32 %v3167_v24, %v1178_v2  ;;  %v1658_v24 = vld [vmem:[#allocation6 + $0x20] sm:$0xff] }
 0x30b   :  { %v1181_v5 = vadd.f32 %v1180_v4, %v1179_v3 }
 0x30d   :  { %1183 = vst.msk [vmem:[#allocation3 + $0x10] sm:$0xff] %vm36_vm1, %v1181_v5  ;;  %2956 = vmatmul.mubr.msk.f32.vlgmr.msra.gmra.mxu1 %vm36_vm1, %v1181_v5  ;;  %2967 = vmatmul.mubr.msk.f32.vlgmr.msra.gmra.mxu0 %vm36_vm1, %v1181_v5 }
 0x30e   :  { %2970 = vmatpush3.msra.mxu1 %v3337_v16  ;;  %2977 = vmatprep.mubr.msk.f32.mxu1 %vm3227_vm2, %v3226_v13 }
 0x30f   :  { %2971 = vmatprep.subr.mxu1 %v3226_v13  ;;  %2981 = vmatpush3.msra.mxu0 %v3343_v17 }
 0x310   :  { %2972 = vmatpush3.msra.mxu1 %v3359_v19  ;;  %2982 = vmatprep.subr.mxu0 %v3226_v13 }
 0x311   :  { %2973 = vmatprep.subr.mxu1 %v3226_v13  ;;  %2983 = vmatpush3.msra.mxu0 %v3353_v18 }
 0x312   :  { %2974 = vmatpush3.msra.mxu1 %v3388_v22  ;;  %2984 = vmatprep.subr.mxu0 %v3226_v13 }
 0x313   :  { %2975 = vmatprep.subr.mxu1 %v3226_v13  ;;  %2985 = vmatpush3.msra.mxu0 %v3367_v20 }
 0x314   :  { %2976 = vmatpush3.msra.mxu1 %v3397_v23  ;;  %2986 = vmatprep.subr.mxu0 %v3226_v13 }
 0x315   :  { %2978 = vmatmul.mubr.msk.f32.vlgmr.msra.gmra.mxu1 %vm36_vm1, %v1181_v5  ;;  %2991 = vmatprep.subr.mxu1 %v3226_v13 }
 0x316   :  { %2992 = vmatpush3.msra.mxu1 %v3414_v25  ;;  %2987 = vmatpush3.msra.mxu0 %v3377_v21 }
 0x317   :  { %2993 = vmatprep.subr.mxu1 %v3226_v13  ;;  %2988 = vmatprep.mubr.msk.f32.mxu0 %vm3227_vm2, %v3226_v13 }
 0x318   :  { %2994 = vmatpush3.msra.mxu1 %v3424_v26  ;;  %2999 = vmatprep.mubr.msk.f32.mxu1 %vm3227_vm2, %v3226_v13 }
 0x319   :  { %2995 = vmatprep.subr.mxu1 %v3226_v13  ;;  %3002 = vmatprep.subr.mxu0 %v3226_v13 }
 0x31a   :  { %2996 = vmatpush3.msra.mxu1 %v3434_v27 }
 0x31b   :  { %2997 = vmatprep.subr.mxu1 %v3226_v13 }
 0x31c   :  { %2998 = vmatpush3.msra.mxu1 %v3443_v28 }
 0x31d   :  { %3013 = vmatprep.subr.mxu1 %v3226_v13 }
 0x3cd   :  { %v1253_v6 = vpop.f32.mrf.mxu1  ;;  %v1323_v8 = vpop.f32.mrf.mxu0 }
 0x3ce   :  { %v1399_v9 = vadd.f32 %v1398_v7, %v1253_v6  ;;  %v1408_v15 = vadd.f32 %v1407_v14, %v1323_v8 }
 0x3cf   :  { %v2957_v10 = vpop.f32.mrf.mxu1  ;;  %v2968_v11 = vpop.f32.mrf.mxu0 }
 0x3d0   :  { %v2607_v12 = vmul.f32 -1.442695, %v1399_v9  ;;  %v2608_v31 = vmul.f32 -1.442695, %v1408_v15 }
 0x3d2   :  { %3168 = vpow2.f32 %v2607_v12  ;;  %v1891_v12 = vld [vmem:[#allocation5 + $0x28] sm:$0xff] }
 0x3d3   :  { %3170 = vpow2.f32 %v2608_v31 }
 0x3d5   :  { %v1393_v29 = vpop.f32.mrf.mxu1 }
 0x3d6   :  { %v1394_v36 = vadd.f32 %v3510_v54, %v1393_v29 }
 0x3d7   :  { %v2979_v30 = vpop.f32.mrf.mxu1 }
 0x3df   :  { %v3169_v32 = vpop.eup %3168 }
 0x3e0   :  { %v1403_v33 = vadd.f32 1.0, %v3169_v32  ;;  %v3171_v34 = vpop.eup %3170 }
 0x3e1   :  { %v1412_v35 = vadd.f32 1.0, %v3171_v34 }
 0x3e2   :  { %3172 = vrcp.f32 %v1403_v33 }
 0x3e3   :  { %3174 = vrcp.f32 %v1412_v35 }
 0x3ef   :  { %v3173_v37 = vpop.eup %3172 }
 0x3f0   :  { %v1417_v38 = vmul.f32 %v3173_v37, %v1394_v36  ;;  %v3175_v41 = vpop.eup %3174 }
 0x3f1   :  { %v1420_v42 = vsub.f32 1.0, %v3175_v41  ;;  %v1422_v45 = vmul.f32 %v3175_v41, %v1181_v5 }
 0x3f2   :  { %v1418_v40 = vadd.f32 %v1417_v38, %v1416_v39  ;;  %v1900_v38 = vld [vmem:[#allocation6 + $0x28] sm:$0xff] }
 0x3f4   :  { %3176 = vtanh.f32 %v1418_v40 }
 0x401   :  { %v3177_v43 = vpop.eup %3176 }
 0x402   :  { %v1421_v44 = vmul.f32 %v3177_v43, %v1420_v42 }
 0x404   :  { %v1423_v46 = vadd.f32 %v1422_v45, %v1421_v44 }
 0x406   :  { %1425 = vst.msk [vmem:[#allocation3 + $0x18] sm:$0xff] %vm36_vm1, %v1423_v46  ;;  %2989 = vmatmul.mubr.msk.f32.vlgmr.msra.gmra.mxu0 %vm36_vm1, %v1423_v46  ;;  %3000 = vmatmul.mubr.msk.f32.vlgmr.msra.gmra.mxu1 %vm36_vm1, %v1423_v46 }
 0x407   :  { %3003 = vmatpush3.msra.mxu0 %v3337_v16  ;;  %3010 = vmatprep.mubr.msk.f32.mxu0 %vm3227_vm2, %v3226_v13 }
 0x408   :  { %3004 = vmatprep.subr.mxu0 %v3226_v13  ;;  %3014 = vmatpush3.msra.mxu1 %v3343_v17 }
 0x409   :  { %3005 = vmatpush3.msra.mxu0 %v3359_v19  ;;  %3015 = vmatprep.subr.mxu1 %v3226_v13 }
 0x40a   :  { %3006 = vmatprep.subr.mxu0 %v3226_v13  ;;  %3016 = vmatpush3.msra.mxu1 %v3353_v18 }
 0x40b   :  { %3007 = vmatpush3.msra.mxu0 %v3388_v22  ;;  %3017 = vmatprep.subr.mxu1 %v3226_v13 }
 0x40c   :  { %3008 = vmatprep.subr.mxu0 %v3226_v13  ;;  %3018 = vmatpush3.msra.mxu1 %v3367_v20 }
 0x40d   :  { %3009 = vmatpush3.msra.mxu0 %v3397_v23  ;;  %3019 = vmatprep.subr.mxu1 %v3226_v13 }
 0x40e   :  { %3011 = vmatmul.mubr.msk.f32.vlgmr.msra.gmra.mxu0 %vm36_vm1, %v1423_v46  ;;  %3024 = vmatprep.subr.mxu0 %v3226_v13 }
 0x40f   :  { %3025 = vmatpush3.msra.mxu0 %v3414_v25  ;;  %3020 = vmatpush3.msra.mxu1 %v3377_v21 }
 0x410   :  { %3026 = vmatprep.subr.mxu0 %v3226_v13  ;;  %3021 = vmatprep.mubr.msk.f32.mxu1 %vm3227_vm2, %v3226_v13 }
 0x411   :  { %3027 = vmatpush3.msra.mxu0 %v3424_v26  ;;  %3032 = vmatprep.mubr.msk.f32.mxu0 %vm3227_vm2, %v3226_v13 }
 0x412   :  { %3028 = vmatprep.subr.mxu0 %v3226_v13  ;;  %3035 = vmatprep.subr.mxu1 %v3226_v13 }
 0x413   :  { %3029 = vmatpush3.msra.mxu0 %v3434_v27 }
 0x414   :  { %3030 = vmatprep.subr.mxu0 %v3226_v13 }
 0x415   :  { %3031 = vmatpush3.msra.mxu0 %v3443_v28 }
 0x416   :  { %3046 = vmatprep.subr.mxu0 %v3226_v13 }
 0x4c6   :  { %v1495_v47 = vpop.f32.mrf.mxu0  ;;  %v1565_v49 = vpop.f32.mrf.mxu1 }
 0x4c7   :  { %v1641_v50 = vadd.f32 %v1640_v48, %v1495_v47  ;;  %v1650_v56 = vadd.f32 %v1649_v55, %v1565_v49  ;;  %v3219_v47 = vld [vmem:[%s3834_s3 + $0x18] sm:$0xff]  ;;  %v3220_v48 = vld [vmem:[%s3834_s3 + $0x10] sm:$0xff]  ;;  %v3221_v49 = vld [vmem:[%s3834_s3 + $0x8] sm:$0xff] }
 0x4c8   :  { %v2990_v51 = vpop.f32.mrf.mxu0  ;;  %v3001_v52 = vpop.f32.mrf.mxu1  ;;  %v2133_v55 = vld [vmem:[#allocation5 + $0x30] sm:$0xff] }
 0x4c9   :  { %v2612_v53 = vmul.f32 -1.442695, %v1641_v50  ;;  %v2613_v59 = vmul.f32 -1.442695, %v1650_v56 }
 0x4cb   :  { %3178 = vpow2.f32 %v2612_v53 }
 0x4cc   :  { %3180 = vpow2.f32 %v2613_v59 }
 0x4ce   :  { %v1635_v57 = vpop.f32.mrf.mxu0 }
 0x4cf   :  { %v1636_v0 = vadd.f32 %v3510_v54, %v1635_v57 }
 0x4d0   :  { %v3012_v58 = vpop.f32.mrf.mxu0 }
 0x4d8   :  { %v3179_v60 = vpop.eup %3178 }
 0x4d9   :  { %v1645_v61 = vadd.f32 1.0, %v3179_v60  ;;  %v3181_v62 = vpop.eup %3180 }
 0x4da   :  { %v1654_v63 = vadd.f32 1.0, %v3181_v62 }
 0x4db   :  { %3182 = vrcp.f32 %v1645_v61 }
 0x4dc   :  { %3184 = vrcp.f32 %v1654_v63 }
 0x4e8   :  { %v3183_v1 = vpop.eup %3182 }
 0x4e9   :  { %v1659_v2 = vmul.f32 %v3183_v1, %v1636_v0  ;;  %v3185_v4 = vpop.eup %3184  ;;  %v2142_v1 = vld [vmem:[#allocation6 + $0x30] sm:$0xff] }
 0x4ea   :  { %v1662_v5 = vsub.f32 1.0, %v3185_v4  ;;  %v1664_v8 = vmul.f32 %v3185_v4, %v1423_v46  ;;  %v3700_v46 = vld [vmem:[%s3834_s3 + $0x58] sm:$0xff] }
 0x4eb   :  { %v1660_v3 = vadd.f32 %v1659_v2, %v1658_v24 }
 0x4ed   :  { %3186 = vtanh.f32 %v1660_v3 }
 0x4fa   :  { %v3187_v6 = vpop.eup %3186 }
 0x4fb   :  { %v1663_v7 = vmul.f32 %v3187_v6, %v1662_v5 }
 0x4fd   :  { %v1665_v9 = vadd.f32 %v1664_v8, %v1663_v7  ;;  %v2405_v8 = vld [vmem:[%s3837_s6 + $0x10] sm:$0xff] }
 0x4ff   :  { %1667 = vst.msk [vmem:[#allocation3 + $0x20] sm:$0xff] %vm36_vm1, %v1665_v9  ;;  %3022 = vmatmul.mubr.msk.f32.vlgmr.msra.gmra.mxu1 %vm36_vm1, %v1665_v9  ;;  %3033 = vmatmul.mubr.msk.f32.vlgmr.msra.gmra.mxu0 %vm36_vm1, %v1665_v9 }
 0x500   :  { %3036 = vmatpush3.msra.mxu1 %v3337_v16  ;;  %3043 = vmatprep.mubr.msk.f32.mxu1 %vm3227_vm2, %v3226_v13 }
 0x501   :  { %3037 = vmatprep.subr.mxu1 %v3226_v13  ;;  %3047 = vmatpush3.msra.mxu0 %v3343_v17  ;;  %v1882_v17 = vld [vmem:[#allocation4 + $0x28] sm:$0xff] }
 0x502   :  { %3038 = vmatpush3.msra.mxu1 %v3359_v19  ;;  %3048 = vmatprep.subr.mxu0 %v3226_v13 }
 0x503   :  { %3039 = vmatprep.subr.mxu1 %v3226_v13  ;;  %3049 = vmatpush3.msra.mxu0 %v3353_v18 }
 0x504   :  { %3040 = vmatpush3.msra.mxu1 %v3388_v22  ;;  %3050 = vmatprep.subr.mxu0 %v3226_v13 }
 0x505   :  { %3041 = vmatprep.subr.mxu1 %v3226_v13  ;;  %3051 = vmatpush3.msra.mxu0 %v3367_v20 }
 0x506   :  { %3042 = vmatpush3.msra.mxu1 %v3397_v23  ;;  %3052 = vmatprep.subr.mxu0 %v3226_v13 }
 0x507   :  { %3044 = vmatmul.mubr.msk.f32.vlgmr.msra.gmra.mxu1 %vm36_vm1, %v1665_v9  ;;  %3057 = vmatprep.subr.mxu1 %v3226_v13 }
 0x508   :  { %3058 = vmatpush3.msra.mxu1 %v3414_v25  ;;  %3053 = vmatpush3.msra.mxu0 %v3377_v21 }
 0x509   :  { %3059 = vmatprep.subr.mxu1 %v3226_v13  ;;  %3054 = vmatprep.mubr.msk.f32.mxu0 %vm3227_vm2, %v3226_v13 }
 0x50a   :  { %3060 = vmatpush3.msra.mxu1 %v3424_v26  ;;  %3065 = vmatprep.mubr.msk.f32.mxu1 %vm3227_vm2, %v3226_v13 }
 0x50b   :  { %3061 = vmatprep.subr.mxu1 %v3226_v13  ;;  %3068 = vmatprep.subr.mxu0 %v3226_v13 }
 0x50c   :  { %3062 = vmatpush3.msra.mxu1 %v3434_v27 }
 0x50d   :  { %3063 = vmatprep.subr.mxu1 %v3226_v13 }
 0x50e   :  { %3064 = vmatpush3.msra.mxu1 %v3443_v28 }
 0x50f   :  { %3079 = vmatprep.subr.mxu1 %v3226_v13 }
 0x5bf   :  { %v1737_v16 = vpop.f32.mrf.mxu1  ;;  %v1807_v18 = vpop.f32.mrf.mxu0 }
 0x5c0   :  { %v1883_v20 = vadd.f32 %v1882_v17, %v1737_v16  ;;  %v1892_v14 = vadd.f32 %v1891_v12, %v1807_v18  ;;  %v2404_v16 = vld [vmem:[%s3837_s6 + $0x8] sm:$0xff]  ;;  %v3223_v17 = vld [vmem:[%s3834_s3 + $0x50] sm:$0xff]  ;;  %v2403_v18 = vld [vmem:[%s3837_s6] sm:$0xff] }
 0x5c1   :  { %v3023_v21 = vpop.f32.mrf.mxu1  ;;  %v3034_v10 = vpop.f32.mrf.mxu0  ;;  %v2398_v12 = vld [vmem:[#allocation3 + $0x18] sm:$0xff] }
 0x5c2   :  { %v2617_v11 = vmul.f32 -1.442695, %v1883_v20  ;;  %v2618_v30 = vmul.f32 -1.442695, %v1892_v14  ;;  %v3224_v20 = vld [vmem:[%s3834_s3 + $0x48] sm:$0xff]  ;;  %v3225_v21 = vld [vmem:[%s3834_s3 + $0x40] sm:$0xff] }
 0x5c3   :  { %v2396_v10 = vld [vmem:[#allocation3 + $0x8] sm:$0xff]  ;;  %v2399_v14 = vld [vmem:[#allocation3 + $0x20] sm:$0xff] }
 0x5c4   :  { %3188 = vpow2.f32 %v2617_v11  ;;  %v2397_v11 = vld [vmem:[#allocation3 + $0x10] sm:$0xff] }
 0x5c5   :  { %3190 = vpow2.f32 %v2618_v30  ;;  %v2366_v30 = vld [vmem:[#allocation4 + $0x38] sm:$0xff] }
 0x5c7   :  { %v1877_v15 = vpop.f32.mrf.mxu1 }
 0x5c8   :  { %v1878_v35 = vadd.f32 %v3510_v54, %v1877_v15 }
 0x5c9   :  { %v3045_v29 = vpop.f32.mrf.mxu1 }
 0x5d1   :  { %v3189_v31 = vpop.eup %3188 }
 0x5d2   :  { %v1887_v32 = vadd.f32 1.0, %v3189_v31  ;;  %v3191_v33 = vpop.eup %3190 }
 0x5d3   :  { %v1896_v34 = vadd.f32 1.0, %v3191_v33 }
 0x5d4   :  { %3192 = vrcp.f32 %v1887_v32 }
 0x5d5   :  { %3194 = vrcp.f32 %v1896_v34 }
 0x5e1   :  { %v3193_v36 = vpop.eup %3192 }
 0x5e2   :  { %v1901_v37 = vmul.f32 %v3193_v36, %v1878_v35  ;;  %v3195_v40 = vpop.eup %3194  ;;  %v2375_v36 = vld [vmem:[#allocation5 + $0x38] sm:$0xff] }
 0x5e3   :  { %v1904_v41 = vsub.f32 1.0, %v3195_v40  ;;  %v1906_v44 = vmul.f32 %v3195_v40, %v1665_v9  ;;  %v2395_v9 = vld [vmem:[#allocation3] sm:$0xff] }
 0x5e4   :  { %v1902_v39 = vadd.f32 %v1901_v37, %v1900_v38  ;;  %v2629_v38 = vld [vmem:[%s3838_s7] ss:$0 sm:$0xff] }
 0x5e6   :  { %3196 = vtanh.f32 %v1902_v39 }
 0x5f3   :  { %v3197_v42 = vpop.eup %3196 }
 0x5f4   :  { %v1905_v43 = vmul.f32 %v3197_v42, %v1904_v41 }
 0x5f6   :  { %v3689_v45 = vadd.f32 %v1906_v44, %v1905_v43 }
 0x5f8   :  { %1909 = vst.msk [vmem:[#allocation3 + $0x28] sm:$0xff] %vm36_vm1, %v3689_v45  ;;  %3055 = vmatmul.mubr.msk.f32.vlgmr.msra.gmra.mxu0 %vm36_vm1, %v3689_v45  ;;  %3066 = vmatmul.mubr.msk.f32.vlgmr.msra.gmra.mxu1 %vm36_vm1, %v3689_v45 }
 0x5f9   :  { %3069 = vmatpush3.msra.mxu0 %v3700_v46  ;;  %3076 = vmatprep.mubr.msk.f32.mxu0 %vm3227_vm2, %v3226_v13 }
 0x5fa   :  { %3070 = vmatprep.subr.mxu0 %v3226_v13  ;;  %3080 = vmatpush3.msra.mxu1 %v3219_v47 }
 0x5fb   :  { %3071 = vmatpush3.msra.mxu0 %v3359_v19  ;;  %3081 = vmatprep.subr.mxu1 %v3226_v13  ;;  %v3222_v19 = vld [vmem:[%s3834_s3] sm:$0xff] }
 0x5fc   :  { %3072 = vmatprep.subr.mxu0 %v3226_v13  ;;  %3082 = vmatpush3.msra.mxu1 %v3220_v48 }
 0x5fd   :  { %3073 = vmatpush3.msra.mxu0 %v3388_v22  ;;  %3083 = vmatprep.subr.mxu1 %v3226_v13  ;;  %v2406_v22 = vld [vmem:[%s3837_s6 + $0x18] sm:$0xff] }
 0x5fe   :  { %3074 = vmatprep.subr.mxu0 %v3226_v13  ;;  %3084 = vmatpush3.msra.mxu1 %v3221_v49 }
 0x5ff   :  { %3075 = vmatpush3.msra.mxu0 %v3397_v23  ;;  %3085 = vmatprep.subr.mxu1 %v3226_v13  ;;  %v2400_v15 = vld [vmem:[#allocation3 + $0x28] sm:$0xff] }
 0x600   :  { %3077 = vmatmul.mubr.msk.f32.vlgmr.msra.gmra.mxu0 %vm36_vm1, %v3689_v45  ;;  %3090 = vmatprep.subr.mxu0 %v3226_v13 }
 0x601   :  { %3091 = vmatpush3.msra.mxu0 %v3414_v25  ;;  %3086 = vmatpush3.msra.mxu1 %v3222_v19  ;;  %v2124_v25 = vld [vmem:[#allocation4 + $0x30] sm:$0xff] }
 0x602   :  { %3092 = vmatprep.subr.mxu0 %v3226_v13  ;;  %3087 = vmatprep.mubr.msk.f32.mxu1 %vm3227_vm2, %v3226_v13 }
 0x603   :  { %3093 = vmatpush3.msra.mxu0 %v3424_v26  ;;  %3098 = vmatprep.mubr.msk.f32.mxu0 %vm3227_vm2, %v3226_v13 }
 0x604   :  { %3094 = vmatprep.subr.mxu0 %v3226_v13  ;;  %3101 = vmatprep.subr.mxu1 %v3226_v13 }
 0x605   :  { %3095 = vmatpush3.msra.mxu0 %v3434_v27 }
 0x606   :  { %3096 = vmatprep.subr.mxu0 %v3226_v13 }
 0x607   :  { %3097 = vmatpush3.msra.mxu0 %v3443_v28 }
 0x608   :  { %3112 = vmatprep.subr.mxu0 %v2406_v22 }
 0x6b8   :  { %v1979_v23 = vpop.f32.mrf.mxu0  ;;  %v2049_v26 = vpop.f32.mrf.mxu1 }
 0x6b9   :  { %v2125_v50 = vadd.f32 %v2124_v25, %v1979_v23  ;;  %v2134_v56 = vadd.f32 %v2133_v55, %v2049_v26 }
 0x6ba   :  { %v3056_v51 = vpop.f32.mrf.mxu0  ;;  %v3067_v52 = vpop.f32.mrf.mxu1 }
 0x6bb   :  { %v2622_v53 = vmul.f32 -1.442695, %v2125_v50  ;;  %v2623_v58 = vmul.f32 -1.442695, %v2134_v56 }
 0x6bd   :  { %3198 = vpow2.f32 %v2622_v53 }
 0x6be   :  { %3200 = vpow2.f32 %v2623_v58 }
 0x6c0   :  { %v2119_v27 = vpop.f32.mrf.mxu0 }
 0x6c1   :  { %v2120_v62 = vadd.f32 %v3510_v54, %v2119_v27  ;;  %v2384_v27 = vld [vmem:[#allocation6 + $0x38] sm:$0xff] }
 0x6c2   :  { %v3078_v57 = vpop.f32.mrf.mxu0 }
 0x6ca   :  { %v3199_v28 = vpop.eup %3198 }
 0x6cb   :  { %v2129_v59 = vadd.f32 1.0, %v3199_v28  ;;  %v3201_v60 = vpop.eup %3200 }
 0x6cc   :  { %v2138_v61 = vadd.f32 1.0, %v3201_v60 }
 0x6cd   :  { %3202 = vrcp.f32 %v2129_v59 }
 0x6ce   :  { %3204 = vrcp.f32 %v2138_v61 }
 0x6da   :  { %v3203_v63 = vpop.eup %3202 }
 0x6db   :  { %v2143_v0 = vmul.f32 %v3203_v63, %v2120_v62  ;;  %v3205_v24 = vpop.eup %3204 }
 0x6dc   :  { %v2146_v3 = vsub.f32 1.0, %v3205_v24  ;;  %v2148_v6 = vmul.f32 %v3205_v24, %v3689_v45 }
 0x6dd   :  { %v2144_v2 = vadd.f32 %v2143_v0, %v2142_v1 }
 0x6df   :  { %3206 = vtanh.f32 %v2144_v2 }
 0x6ec   :  { %v3207_v4 = vpop.eup %3206 }
 0x6ed   :  { %v2147_v5 = vmul.f32 %v3207_v4, %v2146_v3 }
 0x6ef   :  { %v3746_v7 = vadd.f32 %v2148_v6, %v2147_v5 }
 0x6f1   :  { %2151 = vst.msk [vmem:[#allocation3 + $0x30] sm:$0xff] %vm36_vm1, %v3746_v7  ;;  %3088 = vmatmul.mubr.msk.f32.vlgmr.msra.gmra.mxu1 %vm36_vm1, %v3746_v7  ;;  %3099 = vmatmul.mubr.msk.f32.vlgmr.msra.gmra.mxu0 %vm36_vm1, %v3746_v7 }
 0x6f2   :  { %3102 = vmatpush3.msra.mxu1 %v3700_v46  ;;  %3113 = vmatpush3.msra.mxu0 %v2406_v22 }
 0x6f3   :  { %3103 = vmatprep.subr.mxu1 %v3226_v13  ;;  %3114 = vmatprep.subr.mxu0 %v2405_v8 }
 0x6f4   :  { %3120 = vmatprep.mubr.msk.f32.mxu0 %vm36_vm1, %v2395_v9  ;;  %3104 = vmatpush3.msra.mxu1 %v3223_v17 }
 0x6f5   :  { %3115 = vmatpush3.msra.mxu0 %v2405_v8  ;;  %3105 = vmatprep.subr.mxu1 %v3226_v13 }
 0x6f6   :  { %3116 = vmatprep.subr.mxu0 %v2404_v16  ;;  %3106 = vmatpush3.msra.mxu1 %v3224_v20 }
 0x6f7   :  { %3117 = vmatpush3.msra.mxu0 %v2404_v16  ;;  %3107 = vmatprep.subr.mxu1 %v3226_v13 }
 0x6f8   :  { %3118 = vmatprep.subr.mxu0 %v2403_v18  ;;  %3108 = vmatpush3.msra.mxu1 %v3225_v21 }
 0x6f9   :  { %3109 = vmatprep.mubr.msk.f32.mxu1 %vm3227_vm2, %v3226_v13  ;;  %3119 = vmatpush3.msra.mxu0 %v2403_v18  ;;  %v2401_v13 = vld [vmem:[#allocation3 + $0x30] sm:$0xff] }
 0x6fa   :  { %3110 = vmatmul.mubr.msk.f32.vlgmr.msra.gmra.mxu1 %vm36_vm1, %v3746_v7  ;;  %3121 = vmatmul.mubr.msk.f32.vlgmr.msra.gmra.mxu0 %vm36_vm1, %v2396_v10 }
 0x6fb   :  { %3123 = vmatprep.mubr.msk.f32.mxu0 %vm36_vm1, %v2397_v11 }
 0x6fe   :  { %3124 = vmatmul.mubr.msk.f32.gmra.mxu0 %vm36_vm1, %v2398_v12 }
 0x6ff   :  { %3126 = vmatprep.mubr.msk.f32.mxu0 %vm36_vm1, %v2399_v14 }
 0x702   :  { %3127 = vmatmul.mubr.msk.f32.gmra.mxu0 %vm36_vm1, %v2400_v15 }
 0x703   :  { %3129 = vmatprep.mubr.msk.f32.mxu0 %vm36_vm1, %v2401_v13 }
 0x7b1   :  { %v2221_v29 = vpop.f32.mrf.mxu1  ;;  %v2291_v31 = vpop.f32.mrf.mxu0 }
 0x7b2   :  { %v2367_v32 = vadd.f32 %v2366_v30, %v2221_v29  ;;  %v2376_v37 = vadd.f32 %v2375_v36, %v2291_v31 }
 0x7b3   :  { %v3089_v33 = vpop.f32.mrf.mxu1  ;;  %v3100_v34 = vpop.f32.mrf.mxu0 }
 0x7b4   :  { %v2627_v35 = vmul.f32 -1.442695, %v2367_v32  ;;  %v2628_v42 = vmul.f32 -1.442695, %v2376_v37 }
 0x7b6   :  { %3208 = vpow2.f32 %v2627_v35 }
 0x7b7   :  { %3210 = vpow2.f32 %v2628_v42 }
 0x7ba   :  { %v2361_v39 = vpop.f32.mrf.mxu1  ;;  %v3122_v40 = vpop.f32.mrf.mxu0 }
 0x7bb   :  { %v2510_v41 = vadd.f32 %v3122_v40, %v2629_v38  ;;  %v2362_v53 = vadd.f32 %v3510_v54, %v2361_v39 }
 0x7bc   :  { %v3111_v43 = vpop.f32.mrf.mxu1  ;;  %v2504_v44 = vpop.f32.mrf.mxu0 }
 0x7bd   :  { %2544 = vst.msk [vmem:[%s3839_s8 + $0x8] sm:$0xff] %vm65_vm0, %v2510_v41  ;;  %v2505_v45 = vadd.f32 %v2629_v38, %v2504_v44 }
 0x7be   :  { %v3125_v46 = vpop.f32.mrf.mxu0 }
 0x7bf   :  { %2543 = vst.msk [vmem:[%s3839_s8] sm:$0xff] %vm65_vm0, %v2505_v45  ;;  %v2520_v47 = vadd.f32 %v3125_v46, %v2629_v38 }
 0x7c0   :  { %v2514_v48 = vpop.f32.mrf.mxu0 }
 0x7c1   :  { %2546 = vst.msk [vmem:[%s3839_s8 + $0x18] sm:$0xff] %vm65_vm0, %v2520_v47  ;;  %v2515_v49 = vadd.f32 %v2629_v38, %v2514_v48 }
 0x7c2   :  { %v3128_v19 = vpop.f32.mrf.mxu0 }
 0x7c3   :  { %v3209_v22 = vpop.eup %3208  ;;  %2545 = vst.msk [vmem:[%s3839_s8 + $0x10] sm:$0xff] %vm65_vm0, %v2515_v49  ;;  %v2530_v23 = vadd.f32 %v3128_v19, %v2629_v38 }
 0x7c4   :  { %v2371_v25 = vadd.f32 1.0, %v3209_v22  ;;  %v2524_v26 = vpop.f32.mrf.mxu0  ;;  %v3211_v51 = vpop.eup %3210 }
 0x7c5   :  { %2548 = vst.msk [vmem:[%s3839_s8 + $0x28] sm:$0xff] %vm65_vm0, %v2530_v23  ;;  %v2525_v50 = vadd.f32 %v2629_v38, %v2524_v26  ;;  %v2380_v52 = vadd.f32 1.0, %v3211_v51 }
 0x7c6   :  { %3212 = vrcp.f32 %v2371_v25 }
 0x7c7   :  { %2547 = vst.msk [vmem:[%s3839_s8 + $0x20] sm:$0xff] %vm65_vm0, %v2525_v50  ;;  %3214 = vrcp.f32 %v2380_v52 }
 0x7d3   :  { %v3213_v55 = vpop.eup %3212 }
 0x7d4   :  { %v2385_v56 = vmul.f32 %v3213_v55, %v2362_v53  ;;  %v3215_v58 = vpop.eup %3214 }
 0x7d5   :  { %v2388_v28 = vsub.f32 1.0, %v3215_v58  ;;  %v2390_v60 = vmul.f32 %v3215_v58, %v3746_v7 }
 0x7d6   :  { %v2386_v57 = vadd.f32 %v2385_v56, %v2384_v27 }
 0x7d8   :  { %3216 = vtanh.f32 %v2386_v57 }
 0x7e5   :  { %v3217_v59 = vpop.eup %3216 }
 0x7e6   :  { %v2389_v61 = vmul.f32 %v3217_v59, %v2388_v28 }
 0x7e8   :  { %v2391_v62 = vadd.f32 %v2390_v60, %v2389_v61 }
 0x7ea   :  { %2393 = vst.msk [vmem:[#allocation3 + $0x38] sm:$0xff] %vm36_vm1, %v2391_v62  ;;  %2394 = vst.msk [vmem:[#allocation2] sm:$0xff] %vm36_vm1, %v2391_v62 }
 0x7eb   :  { %2554 = vst.msk [vmem:[%s3840_s9] sm:$0xff] %vm36_vm1, %v2391_v62 }
 0x7f1   :  { %v2402_v54 = vld [vmem:[#allocation3 + $0x38] sm:$0xff] }
 0x7f2   :  { %3130 = vmatmul.mubr.msk.f32.gmra.mxu0 %vm36_vm1, %v2402_v54 }
 0x8b2   :  { %v3131_v63 = vpop.f32.mrf.mxu0 }
 0x8b3   :  { %v2540_v0 = vadd.f32 %v3131_v63, %v2629_v38 }
 0x8b4   :  { %v2534_v1 = vpop.f32.mrf.mxu0 }
 0x8b5   :  { %2550 = vst.msk [vmem:[%s3839_s8 + $0x38] sm:$0xff] %vm65_vm0, %v2540_v0  ;;  %v2535_v2 = vadd.f32 %v2629_v38, %v2534_v1 }
 0x8b7   :  { %2549 = vst.msk [vmem:[%s3839_s8 + $0x30] sm:$0xff] %vm65_vm0, %v2535_v2 }

</bundles_post_ra>
